<compile_context>
chip_gen: v6e
topology: v6e:2x2x1
jax: 0.10.0
libtpu: 0.0.40
codegen_flags: <defaults>
</compile_context>

<pallas_src>
import functools
import math

import jax
import jax.numpy as jnp
from jax.experimental import pallas as pl
from jax.experimental.pallas import tpu as pltpu

HIDDEN = 512  # hardcoded in the PyTorch module


def _hard_gumbel_one_hot(logits, axis, out_dtype):
    """one_hot(argmax(logits, axis)) using a single max reduction.

    A monotone int32 key of the float value is packed (high bits) with the reversed
    index along `axis` (low bits): the max of the packed key is unique per row and ties
    on the truncated value resolve to the smallest index (torch.argmax semantics).
    Truncating ceil(log2(d)) low mantissa bits only matters when two entries are within
    a few ULPs — measure-zero under continuous Gumbel noise.
    """
    d = logits.shape[axis]
    nb = max(1, (d - 1).bit_length())
    bits = jax.lax.bitcast_convert_type(logits.astype(jnp.float32), jnp.int32)
    int_min = jnp.int32(-(2 ** 31))
    # Order-preserving int32 key for IEEE-754 floats (no NaNs expected here).
    key = jnp.where(bits < 0, int_min - bits, bits)
    idx = jax.lax.broadcasted_iota(jnp.int32, logits.shape, axis)
    packed = ((key >> nb) << nb) | (jnp.int32(d - 1) - idx)   # distinct per position
    winner = jnp.max(packed, axis=axis, keepdims=True)        # single XLU reduction
    return (packed == winner).astype(out_dtype)


def _mydnn_fused_kernel(x_ref, g_ref,
                        w1_ref, b1_ref, w2_ref, b2_ref,
                        w3t_ref, b3_ref, w4t_ref, b4_ref,
                        o_ref, *, sm_axis):
    f32 = jnp.float32
    t = x_ref[0].astype(f32)                                   # (h, w) for this batch
    num_layers = w1_ref.shape[0]                               # static
    for l in range(num_layers):                                # static unroll, small L
        # Sequential(Linear(w,512), ReLU, Linear(512,w), ReLU)  — MLP over the last axis.
        t = jnp.maximum(jnp.dot(t, w1_ref[l], preferred_element_type=f32) + b1_ref[l], 0.0)
        t = jnp.maximum(jnp.dot(t, w2_ref[l], preferred_element_type=f32) + b2_ref[l], 0.0)
        # Permute -> Sequential(Linear(h,512), ReLU, Linear(512,h), ReLU) -> Permute,
        # folded as left-multiplies with pre-transposed weights (no in-kernel transpose):
        #   relu(relu(t.T @ W3 + b3) @ W4 + b4).T == relu(W4.T @ relu(W3.T @ t + b3[:,None]) + b4[:,None])
        u = jnp.maximum(jnp.dot(w3t_ref[l], t, preferred_element_type=f32) + b3_ref[l], 0.0)
        t = jnp.maximum(jnp.dot(w4t_ref[l], u, preferred_element_type=f32) + b4_ref[l], 0.0)
    # Fused Gumbel-softmax(hard=True) epilogue: forward value == one_hot(argmax(t + g)).
    logits = t + g_ref[0].astype(f32)
    o_ref[0] = _hard_gumbel_one_hot(logits, sm_axis, o_ref.dtype)


def mydnn_forward(x, params, gumbel_noise):
    """Fused Pallas forward of MyDNNModel (ReLU MLP blocks + hard Gumbel softmax head)."""
    b, h, w = x.shape
    w1, b1, w2, b2, w3t, b3, w4t, b4 = (
        params[k] for k in ("w1", "b1", "w2", "b2", "w3t", "b3", "w4t", "b4"))
    # torch: dim = 1 if w < h else 2  ->  per-batch (h, w) matrix axis 0 or 1.
    sm_axis = 0 if w < h else 1

    def full_spec(a):
        zeros = (0,) * a.ndim
        return pl.BlockSpec(a.shape, lambda i: zeros)          # whole array resident in VMEM

    batch_spec = pl.BlockSpec((1, h, w), lambda i: (i, 0, 0))

    kernel = functools.partial(_mydnn_fused_kernel, sm_axis=sm_axis)
    return pl.pallas_call(
        kernel,
        out_shape=jax.ShapeDtypeStruct((b, h, w), x.dtype),
        grid=(b,),
        in_specs=[batch_spec, batch_spec,
                  full_spec(w1), full_spec(b1), full_spec(w2), full_spec(b2),
                  full_spec(w3t), full_spec(b3), full_spec(w4t), full_spec(b4)],
        out_specs=batch_spec,
        compiler_params=pltpu.CompilerParams(dimension_semantics=("parallel",)),
    )(x, gumbel_noise, w1, b1, w2, b2, w3t, b3, w4t, b4)


def init_params(key, h, w, layers, hidden=HIDDEN, dtype=jnp.float32):
    """Per-layer Linear weights in (in, out) form, stacked over layers.

    The h-axis MLP weights are pre-transposed (and biases reshaped for broadcast) in the
    wrapper so the kernel never has to transpose activations for the Permute() ops.
    """
    def linear(k, fan_in, fan_out):
        kw, kb = jax.random.split(k)
        s = 1.0 / math.sqrt(fan_in)
        return (jax.random.uniform(kw, (fan_in, fan_out), dtype, -s, s),
                jax.random.uniform(kb, (fan_out,), dtype, -s, s))

    w1s, b1s, w2s, b2s, w3ts, b3s, w4ts, b4s = ([] for _ in range(8))
    for kl in jax.random.split(key, layers):
        k1, k2, k3, k4 = jax.random.split(kl, 4)
        a1, c1 = linear(k1, w, hidden)        # Linear(w, 512)
        a2, c2 = linear(k2, hidden, w)        # Linear(512, w)
        a3, c3 = linear(k3, h, hidden)        # Linear(h, 512)
        a4, c4 = linear(k4, hidden, h)        # Linear(512, h)
        w1s.append(a1);   b1s.append(c1[None, :])     # (1, hidden)
        w2s.append(a2);   b2s.append(c2[None, :])     # (1, w)
        w3ts.append(a3.T); b3s.append(c3[:, None])    # (hidden, h), (hidden, 1)
        w4ts.append(a4.T); b4s.append(c4[:, None])    # (h, hidden), (h, 1)
    stack = lambda xs: jnp.stack(xs, axis=0)
    return dict(w1=stack(w1s), b1=stack(b1s), w2=stack(w2s), b2=stack(b2s),
                w3t=stack(w3ts), b3=stack(b3s), w4t=stack(w4ts), b4=stack(b4s))


if __name__ == "__main__":
    B, H, W, LAYERS = 2, 8, 16, 2      # w >= h  ->  gumbel softmax over dim=2
    root = jax.random.PRNGKey(0)
    k_params, k_x, k_g = jax.random.split(root, 3)

    params = init_params(k_params, H, W, LAYERS)
    x = jax.random.normal(k_x, (B, H, W), dtype=jnp.float32)
    # Standard Gumbel(0,1) noise (same role as torch's internal sampling).
    g = jax.random.gumbel(k_g, (B, H, W), dtype=jnp.float32)

    y = jax.block_until_ready(mydnn_forward(x, params, g))

    # gumbel_softmax(hard=True) forward is one-hot along the softmax dim:
    # entries in {0,1} and each row sums to exactly 1.
    assert y.shape == x.shape and y.dtype == x.dtype
    sm_dim = 1 if W < H else 2
    row_sums = jnp.sum(y, axis=sm_dim)
    assert bool(jnp.all(jnp.abs(row_sums - 1.0) < 1e-6))
    assert bool(jnp.all((y == 0.0) | (y == 1.0)))

    print("KERNEL_OK")
</pallas_src>

<mosaic_0001>
module attributes {stable_mosaic.version = 11 : i64} {
  func.func @_mydnn_fused_kernel(%arg0: i32, %arg1: memref<1x8x16xf32, #tpu.memory_space<vmem>>, %arg2: memref<1x8x16xf32, #tpu.memory_space<vmem>>, %arg3: memref<2x16x512xf32, #tpu.memory_space<vmem>>, %arg4: memref<2x1x512xf32, #tpu.memory_space<vmem>>, %arg5: memref<2x512x16xf32, #tpu.memory_space<vmem>>, %arg6: memref<2x1x16xf32, #tpu.memory_space<vmem>>, %arg7: memref<2x512x8xf32, #tpu.memory_space<vmem>>, %arg8: memref<2x512x1xf32, #tpu.memory_space<vmem>>, %arg9: memref<2x8x512xf32, #tpu.memory_space<vmem>>, %arg10: memref<2x8x1xf32, #tpu.memory_space<vmem>>, %arg11: memref<1x8x16xf32, #tpu.memory_space<vmem>>) attributes {dimension_semantics = [#tpu.dimension_semantics<parallel>], iteration_bounds = array<i64: 2>, scalar_prefetch = 0 : i64, scratch_operands = 0 : i64, tpu.core_type = #tpu.core_type<tc>, window_params = [{transform_indices = @transform_0, window_bounds = array<i64: 1, 8, 16>}, {transform_indices = @transform_1, window_bounds = array<i64: 1, 8, 16>}, {pipeline_mode = #tpu.pipeline_mode<synchronous>, transform_indices = @transform_2, window_bounds = array<i64: 2, 16, 512>}, {pipeline_mode = #tpu.pipeline_mode<synchronous>, transform_indices = @transform_3, window_bounds = array<i64: 2, 1, 512>}, {pipeline_mode = #tpu.pipeline_mode<synchronous>, transform_indices = @transform_4, window_bounds = array<i64: 2, 512, 16>}, {pipeline_mode = #tpu.pipeline_mode<synchronous>, transform_indices = @transform_5, window_bounds = array<i64: 2, 1, 16>}, {pipeline_mode = #tpu.pipeline_mode<synchronous>, transform_indices = @transform_6, window_bounds = array<i64: 2, 512, 8>}, {pipeline_mode = #tpu.pipeline_mode<synchronous>, transform_indices = @transform_7, window_bounds = array<i64: 2, 512, 1>}, {pipeline_mode = #tpu.pipeline_mode<synchronous>, transform_indices = @transform_8, window_bounds = array<i64: 2, 8, 512>}, {pipeline_mode = #tpu.pipeline_mode<synchronous>, transform_indices = @transform_9, window_bounds = array<i64: 2, 8, 1>}, {transform_indices = @transform_10, window_bounds = array<i64: 1, 8, 16>}]} {
    %c0 = arith.constant 0 : index
    %c0_0 = arith.constant 0 : index
    %c0_1 = arith.constant 0 : index
    %0 = vector.load %arg1[%c0, %c0_0, %c0_1] : memref<1x8x16xf32, #tpu.memory_space<vmem>>, vector<1x8x16xf32>
    %1 = vector.shape_cast %0 : vector<1x8x16xf32> to vector<8x16xf32>
    %c0_2 = arith.constant 0 : index
    %c0_3 = arith.constant 0 : index
    %c0_4 = arith.constant 0 : index
    %2 = vector.load %arg3[%c0_2, %c0_3, %c0_4] : memref<2x16x512xf32, #tpu.memory_space<vmem>>, vector<1x16x512xf32>
    %3 = vector.shape_cast %2 : vector<1x16x512xf32> to vector<16x512xf32>
    %cst = arith.constant dense<0.000000e+00> : vector<8x512xf32>
    %4 = tpu.matmul %1, %3, %cst {dimension_numbers = #tpu.dot_dimension_numbers<[1], [0], [0], [1], [0, 0, 1, 1], [], []>} : vector<8x16xf32>, vector<16x512xf32>, vector<8x512xf32> -> vector<8x512xf32>
    %c0_5 = arith.constant 0 : index
    %c0_6 = arith.constant 0 : index
    %c0_7 = arith.constant 0 : index
    %5 = vector.load %arg4[%c0_5, %c0_6, %c0_7] : memref<2x1x512xf32, #tpu.memory_space<vmem>>, vector<1x1x512xf32>
    %6 = vector.shape_cast %5 : vector<1x1x512xf32> to vector<1x512xf32>
    %7 = vector.broadcast %6 : vector<1x512xf32> to vector<8x512xf32>
    %8 = arith.addf %4, %7 : vector<8x512xf32>
    %cst_8 = arith.constant 0.000000e+00 : f32
    %9 = vector.broadcast %cst_8 : f32 to vector<8x512xf32>
    %10 = arith.maximumf %8, %9 : vector<8x512xf32>
    %c0_9 = arith.constant 0 : index
    %c0_10 = arith.constant 0 : index
    %c0_11 = arith.constant 0 : index
    %11 = vector.load %arg5[%c0_9, %c0_10, %c0_11] : memref<2x512x16xf32, #tpu.memory_space<vmem>>, vector<1x512x16xf32>
    %12 = vector.shape_cast %11 : vector<1x512x16xf32> to vector<512x16xf32>
    %cst_12 = arith.constant dense<0.000000e+00> : vector<8x16xf32>
    %13 = tpu.matmul %10, %12, %cst_12 {dimension_numbers = #tpu.dot_dimension_numbers<[1], [0], [0], [1], [0, 0, 1, 1], [], []>} : vector<8x512xf32>, vector<512x16xf32>, vector<8x16xf32> -> vector<8x16xf32>
    %c0_13 = arith.constant 0 : index
    %c0_14 = arith.constant 0 : index
    %c0_15 = arith.constant 0 : index
    %14 = vector.load %arg6[%c0_13, %c0_14, %c0_15] : memref<2x1x16xf32, #tpu.memory_space<vmem>>, vector<1x1x16xf32>
    %15 = vector.shape_cast %14 : vector<1x1x16xf32> to vector<1x16xf32>
    %16 = vector.broadcast %15 : vector<1x16xf32> to vector<8x16xf32>
    %17 = arith.addf %13, %16 : vector<8x16xf32>
    %cst_16 = arith.constant 0.000000e+00 : f32
    %18 = vector.broadcast %cst_16 : f32 to vector<8x16xf32>
    %19 = arith.maximumf %17, %18 : vector<8x16xf32>
    %c0_17 = arith.constant 0 : index
    %c0_18 = arith.constant 0 : index
    %c0_19 = arith.constant 0 : index
    %20 = vector.load %arg7[%c0_17, %c0_18, %c0_19] : memref<2x512x8xf32, #tpu.memory_space<vmem>>, vector<1x512x8xf32>
    %21 = vector.shape_cast %20 : vector<1x512x8xf32> to vector<512x8xf32>
    %cst_20 = arith.constant dense<0.000000e+00> : vector<512x16xf32>
    %22 = tpu.matmul %21, %19, %cst_20 {dimension_numbers = #tpu.dot_dimension_numbers<[1], [0], [0], [1], [0, 0, 1, 1], [], []>} : vector<512x8xf32>, vector<8x16xf32>, vector<512x16xf32> -> vector<512x16xf32>
    %c0_21 = arith.constant 0 : index
    %c0_22 = arith.constant 0 : index
    %c0_23 = arith.constant 0 : index
    %23 = vector.load %arg8[%c0_21, %c0_22, %c0_23] : memref<2x512x1xf32, #tpu.memory_space<vmem>>, vector<1x512x1xf32>
    %24 = vector.shape_cast %23 : vector<1x512x1xf32> to vector<512x1xf32>
    %25 = vector.broadcast %24 : vector<512x1xf32> to vector<512x16xf32>
    %26 = arith.addf %22, %25 : vector<512x16xf32>
    %cst_24 = arith.constant 0.000000e+00 : f32
    %27 = vector.broadcast %cst_24 : f32 to vector<512x16xf32>
    %28 = arith.maximumf %26, %27 : vector<512x16xf32>
    %c0_25 = arith.constant 0 : index
    %c0_26 = arith.constant 0 : index
    %c0_27 = arith.constant 0 : index
    %29 = vector.load %arg9[%c0_25, %c0_26, %c0_27] : memref<2x8x512xf32, #tpu.memory_space<vmem>>, vector<1x8x512xf32>
    %30 = vector.shape_cast %29 : vector<1x8x512xf32> to vector<8x512xf32>
    %cst_28 = arith.constant dense<0.000000e+00> : vector<8x16xf32>
    %31 = tpu.matmul %30, %28, %cst_28 {dimension_numbers = #tpu.dot_dimension_numbers<[1], [0], [0], [1], [0, 0, 1, 1], [], []>} : vector<8x512xf32>, vector<512x16xf32>, vector<8x16xf32> -> vector<8x16xf32>
    %c0_29 = arith.constant 0 : index
    %c0_30 = arith.constant 0 : index
    %c0_31 = arith.constant 0 : index
    %32 = vector.load %arg10[%c0_29, %c0_30, %c0_31] : memref<2x8x1xf32, #tpu.memory_space<vmem>>, vector<1x8x1xf32>
    %33 = vector.shape_cast %32 : vector<1x8x1xf32> to vector<8x1xf32>
    %34 = vector.broadcast %33 : vector<8x1xf32> to vector<8x16xf32>
    %35 = arith.addf %31, %34 : vector<8x16xf32>
    %cst_32 = arith.constant 0.000000e+00 : f32
    %36 = vector.broadcast %cst_32 : f32 to vector<8x16xf32>
    %37 = arith.maximumf %35, %36 : vector<8x16xf32>
    %c1 = arith.constant 1 : index
    %c0_33 = arith.constant 0 : index
    %c0_34 = arith.constant 0 : index
    %38 = vector.load %arg3[%c1, %c0_33, %c0_34] : memref<2x16x512xf32, #tpu.memory_space<vmem>>, vector<1x16x512xf32>
    %39 = vector.shape_cast %38 : vector<1x16x512xf32> to vector<16x512xf32>
    %cst_35 = arith.constant dense<0.000000e+00> : vector<8x512xf32>
    %40 = tpu.matmul %37, %39, %cst_35 {dimension_numbers = #tpu.dot_dimension_numbers<[1], [0], [0], [1], [0, 0, 1, 1], [], []>} : vector<8x16xf32>, vector<16x512xf32>, vector<8x512xf32> -> vector<8x512xf32>
    %c1_36 = arith.constant 1 : index
    %c0_37 = arith.constant 0 : index
    %c0_38 = arith.constant 0 : index
    %41 = vector.load %arg4[%c1_36, %c0_37, %c0_38] : memref<2x1x512xf32, #tpu.memory_space<vmem>>, vector<1x1x512xf32>
    %42 = vector.shape_cast %41 : vector<1x1x512xf32> to vector<1x512xf32>
    %43 = vector.broadcast %42 : vector<1x512xf32> to vector<8x512xf32>
    %44 = arith.addf %40, %43 : vector<8x512xf32>
    %cst_39 = arith.constant 0.000000e+00 : f32
    %45 = vector.broadcast %cst_39 : f32 to vector<8x512xf32>
    %46 = arith.maximumf %44, %45 : vector<8x512xf32>
    %c1_40 = arith.constant 1 : index
    %c0_41 = arith.constant 0 : index
    %c0_42 = arith.constant 0 : index
    %47 = vector.load %arg5[%c1_40, %c0_41, %c0_42] : memref<2x512x16xf32, #tpu.memory_space<vmem>>, vector<1x512x16xf32>
    %48 = vector.shape_cast %47 : vector<1x512x16xf32> to vector<512x16xf32>
    %cst_43 = arith.constant dense<0.000000e+00> : vector<8x16xf32>
    %49 = tpu.matmul %46, %48, %cst_43 {dimension_numbers = #tpu.dot_dimension_numbers<[1], [0], [0], [1], [0, 0, 1, 1], [], []>} : vector<8x512xf32>, vector<512x16xf32>, vector<8x16xf32> -> vector<8x16xf32>
    %c1_44 = arith.constant 1 : index
    %c0_45 = arith.constant 0 : index
    %c0_46 = arith.constant 0 : index
    %50 = vector.load %arg6[%c1_44, %c0_45, %c0_46] : memref<2x1x16xf32, #tpu.memory_space<vmem>>, vector<1x1x16xf32>
    %51 = vector.shape_cast %50 : vector<1x1x16xf32> to vector<1x16xf32>
    %52 = vector.broadcast %51 : vector<1x16xf32> to vector<8x16xf32>
    %53 = arith.addf %49, %52 : vector<8x16xf32>
    %cst_47 = arith.constant 0.000000e+00 : f32
    %54 = vector.broadcast %cst_47 : f32 to vector<8x16xf32>
    %55 = arith.maximumf %53, %54 : vector<8x16xf32>
    %c1_48 = arith.constant 1 : index
    %c0_49 = arith.constant 0 : index
    %c0_50 = arith.constant 0 : index
    %56 = vector.load %arg7[%c1_48, %c0_49, %c0_50] : memref<2x512x8xf32, #tpu.memory_space<vmem>>, vector<1x512x8xf32>
    %57 = vector.shape_cast %56 : vector<1x512x8xf32> to vector<512x8xf32>
    %cst_51 = arith.constant dense<0.000000e+00> : vector<512x16xf32>
    %58 = tpu.matmul %57, %55, %cst_51 {dimension_numbers = #tpu.dot_dimension_numbers<[1], [0], [0], [1], [0, 0, 1, 1], [], []>} : vector<512x8xf32>, vector<8x16xf32>, vector<512x16xf32> -> vector<512x16xf32>
    %c1_52 = arith.constant 1 : index
    %c0_53 = arith.constant 0 : index
    %c0_54 = arith.constant 0 : index
    %59 = vector.load %arg8[%c1_52, %c0_53, %c0_54] : memref<2x512x1xf32, #tpu.memory_space<vmem>>, vector<1x512x1xf32>
    %60 = vector.shape_cast %59 : vector<1x512x1xf32> to vector<512x1xf32>
    %61 = vector.broadcast %60 : vector<512x1xf32> to vector<512x16xf32>
    %62 = arith.addf %58, %61 : vector<512x16xf32>
    %cst_55 = arith.constant 0.000000e+00 : f32
    %63 = vector.broadcast %cst_55 : f32 to vector<512x16xf32>
    %64 = arith.maximumf %62, %63 : vector<512x16xf32>
    %c1_56 = arith.constant 1 : index
    %c0_57 = arith.constant 0 : index
    %c0_58 = arith.constant 0 : index
    %65 = vector.load %arg9[%c1_56, %c0_57, %c0_58] : memref<2x8x512xf32, #tpu.memory_space<vmem>>, vector<1x8x512xf32>
    %66 = vector.shape_cast %65 : vector<1x8x512xf32> to vector<8x512xf32>
    %cst_59 = arith.constant dense<0.000000e+00> : vector<8x16xf32>
    %67 = tpu.matmul %66, %64, %cst_59 {dimension_numbers = #tpu.dot_dimension_numbers<[1], [0], [0], [1], [0, 0, 1, 1], [], []>} : vector<8x512xf32>, vector<512x16xf32>, vector<8x16xf32> -> vector<8x16xf32>
    %c1_60 = arith.constant 1 : index
    %c0_61 = arith.constant 0 : index
    %c0_62 = arith.constant 0 : index
    %68 = vector.load %arg10[%c1_60, %c0_61, %c0_62] : memref<2x8x1xf32, #tpu.memory_space<vmem>>, vector<1x8x1xf32>
    %69 = vector.shape_cast %68 : vector<1x8x1xf32> to vector<8x1xf32>
    %70 = vector.broadcast %69 : vector<8x1xf32> to vector<8x16xf32>
    %71 = arith.addf %67, %70 : vector<8x16xf32>
    %cst_63 = arith.constant 0.000000e+00 : f32
    %72 = vector.broadcast %cst_63 : f32 to vector<8x16xf32>
    %73 = arith.maximumf %71, %72 : vector<8x16xf32>
    %c0_64 = arith.constant 0 : index
    %c0_65 = arith.constant 0 : index
    %c0_66 = arith.constant 0 : index
    %74 = vector.load %arg2[%c0_64, %c0_65, %c0_66] : memref<1x8x16xf32, #tpu.memory_space<vmem>>, vector<1x8x16xf32>
    %75 = vector.shape_cast %74 : vector<1x8x16xf32> to vector<8x16xf32>
    %76 = arith.addf %73, %75 : vector<8x16xf32>
    %77 = tpu.bitcast %76 : vector<8x16xf32> -> vector<8x16xi32>
    %c0_i32 = arith.constant 0 : i32
    %78 = vector.broadcast %c0_i32 : i32 to vector<8x16xi32>
    %79 = arith.cmpi slt, %77, %78 : vector<8x16xi32>
    %c-2147483648_i32 = arith.constant -2147483648 : i32
    %80 = vector.broadcast %c-2147483648_i32 : i32 to vector<8x16xi32>
    %81 = arith.subi %80, %77 : vector<8x16xi32>
    %82 = arith.select %79, %81, %77 : vector<8x16xi1>, vector<8x16xi32>
    %83 = tpu.iota {dimensions = array<i32: 1>} : vector<8x16xi32>
    %c4_i32 = arith.constant 4 : i32
    %84 = vector.broadcast %c4_i32 : i32 to vector<8x16xi32>
    %85 = arith.shrsi %82, %84 : vector<8x16xi32>
    %c4_i32_67 = arith.constant 4 : i32
    %86 = vector.broadcast %c4_i32_67 : i32 to vector<8x16xi32>
    %87 = arith.shli %85, %86 : vector<8x16xi32>
    %c15_i32 = arith.constant 15 : i32
    %88 = vector.broadcast %c15_i32 : i32 to vector<8x16xi32>
    %89 = arith.subi %88, %83 : vector<8x16xi32>
    %90 = arith.ori %87, %89 : vector<8x16xi32>
    %cst_68 = arith.constant dense<-2147483648> : vector<8xi32>
    %91 = vector.multi_reduction <maxsi>, %90, %cst_68 [1] : vector<8x16xi32> to vector<8xi32>
    %92 = vector.shape_cast %91 : vector<8xi32> to vector<8x1xi32>
    %93 = vector.broadcast %92 : vector<8x1xi32> to vector<8x16xi32>
    %94 = arith.cmpi eq, %90, %93 : vector<8x16xi32>
    %95 = arith.extui %94 : vector<8x16xi1> to vector<8x16xi32>
    %96 = arith.sitofp %95 : vector<8x16xi32> to vector<8x16xf32>
    %c0_69 = arith.constant 0 : index
    %c0_70 = arith.constant 0 : index
    %c0_71 = arith.constant 0 : index
    %97 = vector.load %arg11[%c0_69, %c0_70, %c0_71] : memref<1x8x16xf32, #tpu.memory_space<vmem>>, vector<1x8x16xf32>
    %98 = vector.shape_cast %97 : vector<1x8x16xf32> to vector<8x16xf32>
    %99 = vector.shape_cast %96 : vector<8x16xf32> to vector<1x8x16xf32>
    tpu.vector_store %arg11[%c0_69, %c0_70, %c0_71], %99 {strides = array<i32>} : memref<1x8x16xf32, #tpu.memory_space<vmem>>, vector<1x8x16xf32>,
    return
  }
  func.func @transform_0(%arg0: i32) -> (i32, i32, i32) {
    %c0_i32 = arith.constant 0 : i32
    %c0_i32_0 = arith.constant 0 : i32
    %c0_i32_1 = arith.constant 0 : i32
    return %arg0, %c0_i32, %c0_i32_0 : i32, i32, i32
  }
  func.func @transform_1(%arg0: i32) -> (i32, i32, i32) {
    %c0_i32 = arith.constant 0 : i32
    %c0_i32_0 = arith.constant 0 : i32
    %c0_i32_1 = arith.constant 0 : i32
    return %arg0, %c0_i32, %c0_i32_0 : i32, i32, i32
  }
  func.func @transform_2(%arg0: i32) -> (i32, i32, i32) {
    %c0_i32 = arith.constant 0 : i32
    %c0_i32_0 = arith.constant 0 : i32
    %c0_i32_1 = arith.constant 0 : i32
    %c0_i32_2 = arith.constant 0 : i32
    return %c0_i32, %c0_i32_0, %c0_i32_1 : i32, i32, i32
  }
  func.func @transform_3(%arg0: i32) -> (i32, i32, i32) {
    %c0_i32 = arith.constant 0 : i32
    %c0_i32_0 = arith.constant 0 : i32
    %c0_i32_1 = arith.constant 0 : i32
    %c0_i32_2 = arith.constant 0 : i32
    return %c0_i32, %c0_i32_0, %c0_i32_1 : i32, i32, i32
  }
  func.func @transform_4(%arg0: i32) -> (i32, i32, i32) {
    %c0_i32 = arith.constant 0 : i32
    %c0_i32_0 = arith.constant 0 : i32
    %c0_i32_1 = arith.constant 0 : i32
    %c0_i32_2 = arith.constant 0 : i32
    return %c0_i32, %c0_i32_0, %c0_i32_1 : i32, i32, i32
  }
  func.func @transform_5(%arg0: i32) -> (i32, i32, i32) {
    %c0_i32 = arith.constant 0 : i32
    %c0_i32_0 = arith.constant 0 : i32
    %c0_i32_1 = arith.constant 0 : i32
    %c0_i32_2 = arith.constant 0 : i32
    return %c0_i32, %c0_i32_0, %c0_i32_1 : i32, i32, i32
  }
  func.func @transform_6(%arg0: i32) -> (i32, i32, i32) {
    %c0_i32 = arith.constant 0 : i32
    %c0_i32_0 = arith.constant 0 : i32
    %c0_i32_1 = arith.constant 0 : i32
    %c0_i32_2 = arith.constant 0 : i32
    return %c0_i32, %c0_i32_0, %c0_i32_1 : i32, i32, i32
  }
  func.func @transform_7(%arg0: i32) -> (i32, i32, i32) {
    %c0_i32 = arith.constant 0 : i32
    %c0_i32_0 = arith.constant 0 : i32
    %c0_i32_1 = arith.constant 0 : i32
    %c0_i32_2 = arith.constant 0 : i32
    return %c0_i32, %c0_i32_0, %c0_i32_1 : i32, i32, i32
  }
  func.func @transform_8(%arg0: i32) -> (i32, i32, i32) {
    %c0_i32 = arith.constant 0 : i32
    %c0_i32_0 = arith.constant 0 : i32
    %c0_i32_1 = arith.constant 0 : i32
    %c0_i32_2 = arith.constant 0 : i32
    return %c0_i32, %c0_i32_0, %c0_i32_1 : i32, i32, i32
  }
  func.func @transform_9(%arg0: i32) -> (i32, i32, i32) {
    %c0_i32 = arith.constant 0 : i32
    %c0_i32_0 = arith.constant 0 : i32
    %c0_i32_1 = arith.constant 0 : i32
    %c0_i32_2 = arith.constant 0 : i32
    return %c0_i32, %c0_i32_0, %c0_i32_1 : i32, i32, i32
  }
  func.func @transform_10(%arg0: i32) -> (i32, i32, i32) {
    %c0_i32 = arith.constant 0 : i32
    %c0_i32_0 = arith.constant 0 : i32
    %c0_i32_1 = arith.constant 0 : i32
    return %arg0, %c0_i32, %c0_i32_0 : i32, i32, i32
  }
}

</mosaic_0001>

<bundles_post_ra>
// kernel: tpu_custom_call.1
= control target key start
LH: loop header
LB: loop body
LE: loop exit
PB: predicated region body
PF: predicated region fallthrough
CT: control target
= control target key end

     0   :  { %15 = vsyncpa [#allocation3], 0  ;;  %s6864_s0 = inlined_call_operand.vmem [shape: f32[2,8,16], index: 0, kind: input, shape index: {}]   ;;  %s6865_s1 = inlined_call_operand.vmem [shape: f32[2,8,16], index: 1, kind: input, shape index: {}]   ;;  %s6866_s2 = inlined_call_operand.vmem [shape: f32[2,16,512], index: 2, kind: input, shape index: {}]   ;;  %s6867_s3 = inlined_call_operand.vmem [shape: f32[2,1,512], index: 3, kind: input, shape index: {}]   ;;  %s6868_s4 = inlined_call_operand.vmem [shape: f32[2,512,16], index: 4, kind: input, shape index: {}]   ;;  %s6869_s5 = inlined_call_operand.vmem [shape: f32[2,1,16], index: 5, kind: input, shape index: {}]   ;;  %s6870_s6 = inlined_call_operand.vmem [shape: f32[2,512,8], index: 6, kind: input, shape index: {}]   ;;  %s6871_s7 = inlined_call_operand.vmem [shape: f32[2,512,1], index: 7, kind: input, shape index: {}]   ;;  %s6872_s8 = inlined_call_operand.vmem [shape: f32[2,8,512], index: 8, kind: input, shape index: {}]   ;;  %s6873_s9 = inlined_call_operand.vmem [shape: f32[2,8,1], index: 9, kind: input, shape index: {}]   ;;  %s6874_s10 = inlined_call_operand.hbm [shape: f32[2,8,16], index: 10, kind: output, shape index: {}]  }
   0x1   :  { %17 = vsyncpa [#allocation3 + $0x1], 0  ;;  %s4885_s13 = smov 0   ;;  %s4887_s14 = smov 0  }
   0x2   :  { %s4889_s15 = smov 0   ;;  %s4891_s16 = smov 0  }
   0x3 LB: > { %6886 = sst [smem:[#allocation5_spill]] %s4821_s15  ;;  %s4906_s17 = sadd.s32 4294967295, %s4825_s16   ;;  %s4825_s16 = sphi %s4891_s16, %s6957_s16   ;;  %s4821_s15 = sphi %s4889_s15, %s6954_s15   ;;  %s4817_s14 = sphi %s4887_s14, %s6956_s14   ;;  %s4813_s13 = sphi %s4885_s13, %s6955_s13  }
   0x4   : > { %s3761_s18 = sadd.s32 4294967294, %s4825_s16   ;;  %s4910_s19 = sadd.s32 1, %s4825_s16  }
   0x5   : > { %s250_s20 = sadd.s32 1, %s4821_s15  ;;  %s247_s21 = ssub.s32 %s4825_s16, %s4910_s19 }
   0x6   : > { %p260_p0 = scmp.ne.s32.totalorder %s4821_s15, %s4817_s14  ;;  %p248_p1 = scmp.eq.s32.totalorder %s247_s21, 0 }
   0x7   : > { %p261_p2 = scmp.eq.s32.totalorder %s4906_s17, 1  ;;  %p266_p3 = scmp.ne.s32.totalorder %s4817_s14, %s4813_s13 }
   0x8   : > { %p267_p4 = scmp.eq.s32.totalorder %s3761_s18, 1  ;;  %p3764_p7 = scmp.ge.s32.totalorder %s4825_s16, 1 }
   0x9   : > { %s4921_s22 = scalar_select %p248_p1, %s4821_s15, %s250_s20  }
   0xa   : > { %p4923_p5 = por %p261_p2, %p260_p0  ;;  %p4927_p6 = por %p267_p4, %p266_p3 }
   0xb   : > { %6887 = sst [smem:[#allocation6_spill]] %s4921_s22  ;;  %p323_p8 = scmp.lt.s32.totalorder %s4825_s16, 3 }
   0xd   : > { %p324_p9 = pnand %p3764_p7, %p323_p8 }
   0xf   : > { %327 = sbr.rel (%p324_p9) target bundleno = 2228 (0x8b4), region = 60 }
  0x14   : > { %v378_v0 = vld [vmem:[%s6866_s2 + $0x28] sm:$0xff]  ;;  %v380_v1 = vld [vmem:[%s6866_s2 + $0x38] sm:$0xff]  ;;  %v377_v2 = vld [vmem:[%s6866_s2 + $0x20] sm:$0xff]  ;;  %p364_p10 = scmp.lt.s32.totalorder %s4906_s17, 1  ;;  %v6881_v10 = vmov 0.0   ;;  %vm403_vm0 = vcmask 130048  }
  0x15   : > { %435 = vmatprep.subr.mxu0 %v378_v0  ;;  %506 = vmatprep.subr.mxu1 %v380_v1  ;;  %v379_v3 = vld [vmem:[%s6866_s2 + $0x30] sm:$0xff]  ;;  %v374_v4 = vld [vmem:[%s6866_s2 + $0x8] sm:$0xff]  ;;  %v376_v5 = vld [vmem:[%s6866_s2 + $0x18] sm:$0xff]  ;;  %vm1213_vm1 = vcmask 64512   ;;  %s4111_s25 = sshll.u32 %s4906_s17, 7 }
  0x16   : > { %436 = vmatpush1.msra.mxu0 %v377_v2  ;;  %507 = vmatpush1.msra.mxu1 %v379_v3  ;;  %v373_v6 = vld [vmem:[%s6866_s2] sm:$0xff]  ;;  %v375_v7 = vld [vmem:[%s6866_s2 + $0x10] sm:$0xff]  ;;  %s4959_s30 = scalar_select %p364_p10, %s4906_s17, 1  ;;  %v584_v8 = vld [vmem:[%s6868_s4 + $0xf8] sm:$0xff] }
  0x17   : > { %437 = vmatprep.subr.mxu0 %v374_v4  ;;  %508 = vmatprep.subr.mxu1 %v376_v5  ;;  %v616_v9 = vld [vmem:[%s6868_s4 + $0x1f8] sm:$0xff]  ;;  %v583_v14 = vld [vmem:[%s6868_s4 + $0xf0] sm:$0xff]  ;;  %v582_v18 = vld [vmem:[%s6868_s4 + $0xe8] sm:$0xff]  ;;  %s6827_s11 = scalar_lea.hbm %s6874_s10, %s4111_s25  ;;  %s4829_s17 = smov [#allocation2]  }
  0x18   : > { %438 = vmatpush1.msra.mxu0 %v373_v6  ;;  %471 = vmatprep.mubr.f32.mxu0 %v6881_v10  ;;  %s3766_s21 = sshll.u32 %s4959_s30, 3  ;;  %v568_v11 = vld [vmem:[%s6868_s4 + $0x78] sm:$0xff]  ;;  %v615_v15 = vld [vmem:[%s6868_s4 + $0x1f0] sm:$0xff]  ;;  %v614_v19 = vld [vmem:[%s6868_s4 + $0x1e8] sm:$0xff]  ;;  %s361_s30 = sand.u32 1, %s4817_s14  }
  0x19   : > { %509 = vmatpush1.msra.mxu1 %v375_v7  ;;  %542 = vmatprep.mubr.f32.mxu1 %v6881_v10  ;;  %s367_s27 = scalar_lea.vmem %s6864_s0, %s3766_s21  ;;  %v600_v12 = vld [vmem:[%s6868_s4 + $0x178] sm:$0xff]  ;;  %v567_v16 = vld [vmem:[%s6868_s4 + $0x70] sm:$0xff]  ;;  %v566_v20 = vld [vmem:[%s6868_s4 + $0x68] sm:$0xff]  ;;  %s371_s20 = scalar_lea.vmem %s6865_s1, %s3766_s21 }
  0x1a   : > { %v372_v13 = vld [vmem:[%s367_s27] sm:$0xff]  ;;  %4114 = vmatprep.subr.mxu0 %v584_v8  ;;  %4149 = vmatprep.subr.mxu1 %v616_v9  ;;  %v599_v17 = vld [vmem:[%s6868_s4 + $0x170] sm:$0xff]  ;;  %v598_v21 = vld [vmem:[%s6868_s4 + $0x168] sm:$0xff]  ;;  %s3765_s21 = sshll.u32 %s361_s30, 3  ;;  %s3677_s15 = scalar_lea.sflag [#allocation3], %s361_s30 }
  0x1b   : > { %3768 = vmatmul.mubr.msk.f32.vlgmr.msra.gmra.mxu0 %vm403_vm0, %v372_v13  ;;  %3769 = vmatmul.mubr.msk.f32.vlgmr.msra.gmra.mxu1 %vm403_vm0, %v372_v13  ;;  %v581_v22 = vld [vmem:[%s6868_s4 + $0xe0] sm:$0xff]  ;;  %v580_v26 = vld [vmem:[%s6868_s4 + $0xd8] sm:$0xff]  ;;  %v579_v30 = vld [vmem:[%s6868_s4 + $0xd0] sm:$0xff]  ;;  %v4828_v13 = vmov 0   ;;  %s363_s26 = scalar_lea.vmem [#allocation2], %s3765_s21  ;;  %s4769_s12 = sshll.u32 %s4829_s17, 4  ;;  %s4770_s12 = int_to_ptr.vmem [resolvable:$false] %s4769_s12 }
  0x1c   : > { %4115 = vmatpush3.msra.mxu0 %v568_v11  ;;  %4150 = vmatpush3.msra.mxu1 %v600_v12  ;;  %v613_v23 = vld [vmem:[%s6868_s4 + $0x1e0] sm:$0xff]  ;;  %v612_v27 = vld [vmem:[%s6868_s4 + $0x1d8] sm:$0xff]  ;;  %v611_v31 = vld [vmem:[%s6868_s4 + $0x1d0] sm:$0xff]  ;;  %s3690_s28 = sshll.u32 %s363_s26, 4  ;;  %s4771_s18 = scalar_lea.vmem %s4770_s12, 256  ;;  %s3691_s28 = int_to_ptr.vmem [resolvable:$true] %s3690_s28 }
  0x1d   : > { %4116 = vmatprep.subr.mxu0 %v583_v14  ;;  %4151 = vmatprep.subr.mxu1 %v615_v15  ;;  %v565_v24 = vld [vmem:[%s6868_s4 + $0x60] sm:$0xff]  ;;  %v564_v28 = vld [vmem:[%s6868_s4 + $0x58] sm:$0xff]  ;;  %v563_v32 = vld [vmem:[%s6868_s4 + $0x50] sm:$0xff]  ;;  %s4765_s22 = scalar_lea.vmem %s3691_s28, 128  ;;  %p4772_p0 = scmp.lt.s32.totalorder %s3691_s28, %s4770_s12 }
  0x1e   : > { %4117 = vmatpush3.msra.mxu0 %v567_v16  ;;  %4152 = vmatpush3.msra.mxu1 %v599_v17  ;;  %v597_v25 = vld [vmem:[%s6868_s4 + $0x160] sm:$0xff]  ;;  %v596_v29 = vld [vmem:[%s6868_s4 + $0x158] sm:$0xff]  ;;  %v595_v33 = vld [vmem:[%s6868_s4 + $0x150] sm:$0xff]  ;;  %p4766_p11 = scmp.ne.s32.totalorder %s3691_s28, %s4765_s22  ;;  %p4773_p1 = scmp.lt.s32.totalorder %s4771_s18, %s4765_s22 }
  0x1f   : > { %4118 = vmatprep.subr.mxu0 %v582_v18  ;;  %4153 = vmatprep.subr.mxu1 %v614_v19  ;;  %v578_v34 = vld [vmem:[%s6868_s4 + $0xc8] sm:$0xff]  ;;  %v577_v38 = vld [vmem:[%s6868_s4 + $0xc0] sm:$0xff]  ;;  %v576_v42 = vld [vmem:[%s6868_s4 + $0xb8] sm:$0xff] }
  0x20   : > { %4119 = vmatpush3.msra.mxu0 %v566_v20  ;;  %4154 = vmatpush3.msra.mxu1 %v598_v21  ;;  %v610_v35 = vld [vmem:[%s6868_s4 + $0x1c8] sm:$0xff]  ;;  %v609_v39 = vld [vmem:[%s6868_s4 + $0x1c0] sm:$0xff]  ;;  %v608_v43 = vld [vmem:[%s6868_s4 + $0x1b8] sm:$0xff]  ;;  %p4767_p12 = pnand %p4766_p11, %p4923_p5  ;;  %p4774_p2 = por %p4773_p1, %p4772_p0 }
  0x21   : > { %4120 = vmatprep.subr.mxu0 %v581_v22  ;;  %4155 = vmatprep.subr.mxu1 %v613_v23  ;;  %v562_v36 = vld [vmem:[%s6868_s4 + $0x48] sm:$0xff]  ;;  %v561_v40 = vld [vmem:[%s6868_s4 + $0x40] sm:$0xff]  ;;  %v560_v44 = vld [vmem:[%s6868_s4 + $0x38] sm:$0xff] }
  0x22   : > { %4121 = vmatpush3.msra.mxu0 %v565_v24  ;;  %4156 = vmatpush3.msra.mxu1 %v597_v25  ;;  %v594_v37 = vld [vmem:[%s6868_s4 + $0x148] sm:$0xff]  ;;  %v593_v41 = vld [vmem:[%s6868_s4 + $0x140] sm:$0xff]  ;;  %v592_v45 = vld [vmem:[%s6868_s4 + $0x138] sm:$0xff]  ;;  %p4768_p13 = pneg %p4767_p12 }
  0x23   : > { %4122 = vmatprep.subr.mxu0 %v580_v26  ;;  %4157 = vmatprep.subr.mxu1 %v612_v27  ;;  %v575_v46 = vld [vmem:[%s6868_s4 + $0xb0] sm:$0xff]  ;;  %v574_v50 = vld [vmem:[%s6868_s4 + $0xa8] sm:$0xff]  ;;  %v573_v54 = vld [vmem:[%s6868_s4 + $0xa0] sm:$0xff] }
  0x24   : > { %4123 = vmatpush3.msra.mxu0 %v564_v28  ;;  %4158 = vmatpush3.msra.mxu1 %v596_v29  ;;  %v607_v47 = vld [vmem:[%s6868_s4 + $0x1b0] sm:$0xff]  ;;  %v606_v51 = vld [vmem:[%s6868_s4 + $0x1a8] sm:$0xff]  ;;  %v605_v55 = vld [vmem:[%s6868_s4 + $0x1a0] sm:$0xff]  ;;  %p4775_p3 = pnand %p4774_p2, %p4768_p13 }
  0x25   : > { %4124 = vmatprep.subr.mxu0 %v579_v30  ;;  %4159 = vmatprep.subr.mxu1 %v611_v31  ;;  %v559_v48 = vld [vmem:[%s6868_s4 + $0x30] sm:$0xff]  ;;  %v558_v52 = vld [vmem:[%s6868_s4 + $0x28] sm:$0xff]  ;;  %v557_v56 = vld [vmem:[%s6868_s4 + $0x20] sm:$0xff] }
  0x26   : > { %4125 = vmatpush3.msra.mxu0 %v563_v32  ;;  %4160 = vmatpush3.msra.mxu1 %v595_v33  ;;  %v591_v49 = vld [vmem:[%s6868_s4 + $0x130] sm:$0xff]  ;;  %v590_v53 = vld [vmem:[%s6868_s4 + $0x128] sm:$0xff]  ;;  %v589_v57 = vld [vmem:[%s6868_s4 + $0x120] sm:$0xff] }
  0x27   : > { %4126 = vmatprep.subr.mxu0 %v578_v34  ;;  %4161 = vmatprep.subr.mxu1 %v610_v35  ;;  %v572_v58 = vld [vmem:[%s6868_s4 + $0x98] sm:$0xff]  ;;  %v571_v62 = vld [vmem:[%s6868_s4 + $0x90] sm:$0xff]  ;;  %v570_v2 = vld [vmem:[%s6868_s4 + $0x88] sm:$0xff] }
  0x28   : > { %4127 = vmatpush3.msra.mxu0 %v562_v36  ;;  %4162 = vmatpush3.msra.mxu1 %v594_v37  ;;  %v604_v59 = vld [vmem:[%s6868_s4 + $0x198] sm:$0xff]  ;;  %v603_v63 = vld [vmem:[%s6868_s4 + $0x190] sm:$0xff]  ;;  %v602_v3 = vld [vmem:[%s6868_s4 + $0x188] sm:$0xff] }
  0x29   : > { %4128 = vmatprep.subr.mxu0 %v577_v38  ;;  %4163 = vmatprep.subr.mxu1 %v609_v39  ;;  %v556_v60 = vld [vmem:[%s6868_s4 + $0x18] sm:$0xff]  ;;  %v555_v0 = vld [vmem:[%s6868_s4 + $0x10] sm:$0xff]  ;;  %v554_v4 = vld [vmem:[%s6868_s4 + $0x8] sm:$0xff] }
  0x2a   : > { %4129 = vmatpush3.msra.mxu0 %v561_v40  ;;  %4164 = vmatpush3.msra.mxu1 %v593_v41  ;;  %v588_v61 = vld [vmem:[%s6868_s4 + $0x118] sm:$0xff]  ;;  %v587_v1 = vld [vmem:[%s6868_s4 + $0x110] sm:$0xff]  ;;  %v586_v5 = vld [vmem:[%s6868_s4 + $0x108] sm:$0xff] }
  0x2b   : > { %4130 = vmatprep.subr.mxu0 %v576_v42  ;;  %4165 = vmatprep.subr.mxu1 %v608_v43  ;;  %v569_v6 = vld [vmem:[%s6868_s4 + $0x80] sm:$0xff]  ;;  %v860_v11 = vld [vmem:[%s6871_s7 + $0xf8] sm:$0xff]  ;;  %v859_v12 = vld [vmem:[%s6871_s7 + $0xf0] sm:$0xff] }
  0x2c   : > { %4131 = vmatpush3.msra.mxu0 %v560_v44  ;;  %4166 = vmatpush3.msra.mxu1 %v592_v45  ;;  %v601_v7 = vld [vmem:[%s6868_s4 + $0x180] sm:$0xff]  ;;  %v844_v14 = vld [vmem:[%s6871_s7 + $0x78] sm:$0xff]  ;;  %v843_v15 = vld [vmem:[%s6871_s7 + $0x70] sm:$0xff] }
  0x2d   : > { %4132 = vmatprep.subr.mxu0 %v575_v46  ;;  %4167 = vmatprep.subr.mxu1 %v607_v47  ;;  %v553_v8 = vld [vmem:[%s6868_s4] sm:$0xff]  ;;  %v858_v16 = vld [vmem:[%s6871_s7 + $0xe8] sm:$0xff]  ;;  %v856_v20 = vld [vmem:[%s6871_s7 + $0xd8] sm:$0xff] }
  0x2e   : > { %4133 = vmatpush3.msra.mxu0 %v559_v48  ;;  %4168 = vmatpush3.msra.mxu1 %v591_v49  ;;  %v585_v9 = vld [vmem:[%s6868_s4 + $0x100] sm:$0xff]  ;;  %v842_v17 = vld [vmem:[%s6871_s7 + $0x68] sm:$0xff]  ;;  %v840_v21 = vld [vmem:[%s6871_s7 + $0x58] sm:$0xff] }
  0x2f   : > { %4134 = vmatprep.subr.mxu0 %v574_v50  ;;  %4169 = vmatprep.subr.mxu1 %v606_v51  ;;  %v857_v18 = vld [vmem:[%s6871_s7 + $0xe0] sm:$0xff]  ;;  %v855_v22 = vld [vmem:[%s6871_s7 + $0xd0] sm:$0xff]  ;;  %v854_v24 = vld [vmem:[%s6871_s7 + $0xc8] sm:$0xff] }
  0x30   : > { %4135 = vmatpush3.msra.mxu0 %v558_v52  ;;  %4170 = vmatpush3.msra.mxu1 %v590_v53  ;;  %v841_v19 = vld [vmem:[%s6871_s7 + $0x60] sm:$0xff]  ;;  %v839_v23 = vld [vmem:[%s6871_s7 + $0x50] sm:$0xff]  ;;  %v838_v25 = vld [vmem:[%s6871_s7 + $0x48] sm:$0xff] }
  0x31   : > { %4136 = vmatprep.subr.mxu0 %v573_v54  ;;  %4171 = vmatprep.subr.mxu1 %v605_v55  ;;  %v853_v26 = vld [vmem:[%s6871_s7 + $0xc0] sm:$0xff]  ;;  %v852_v28 = vld [vmem:[%s6871_s7 + $0xb8] sm:$0xff]  ;;  %v851_v30 = vld [vmem:[%s6871_s7 + $0xb0] sm:$0xff] }
  0x32   : > { %4137 = vmatpush3.msra.mxu0 %v557_v56  ;;  %4172 = vmatpush3.msra.mxu1 %v589_v57  ;;  %v837_v27 = vld [vmem:[%s6871_s7 + $0x40] sm:$0xff]  ;;  %v836_v29 = vld [vmem:[%s6871_s7 + $0x38] sm:$0xff]  ;;  %v835_v31 = vld [vmem:[%s6871_s7 + $0x30] sm:$0xff] }
  0x33   : > { %4138 = vmatprep.subr.mxu0 %v572_v58  ;;  %4173 = vmatprep.subr.mxu1 %v604_v59  ;;  %v850_v32 = vld [vmem:[%s6871_s7 + $0xa8] sm:$0xff]  ;;  %v849_v34 = vld [vmem:[%s6871_s7 + $0xa0] sm:$0xff]  ;;  %v848_v36 = vld [vmem:[%s6871_s7 + $0x98] sm:$0xff] }
  0x34   : > { %4139 = vmatpush3.msra.mxu0 %v556_v60  ;;  %4174 = vmatpush3.msra.mxu1 %v588_v61  ;;  %v834_v33 = vld [vmem:[%s6871_s7 + $0x28] sm:$0xff]  ;;  %v833_v35 = vld [vmem:[%s6871_s7 + $0x20] sm:$0xff]  ;;  %v832_v37 = vld [vmem:[%s6871_s7 + $0x18] sm:$0xff] }
  0x35   : > { %4140 = vmatprep.subr.mxu0 %v571_v62  ;;  %4175 = vmatprep.subr.mxu1 %v603_v63  ;;  %v847_v38 = vld [vmem:[%s6871_s7 + $0x90] sm:$0xff]  ;;  %v846_v40 = vld [vmem:[%s6871_s7 + $0x88] sm:$0xff]  ;;  %v845_v42 = vld [vmem:[%s6871_s7 + $0x80] sm:$0xff] }
  0x36   : > { %4141 = vmatpush3.msra.mxu0 %v555_v0  ;;  %4176 = vmatpush3.msra.mxu1 %v587_v1  ;;  %v831_v39 = vld [vmem:[%s6871_s7 + $0x10] sm:$0xff]  ;;  %v830_v41 = vld [vmem:[%s6871_s7 + $0x8] sm:$0xff]  ;;  %v829_v43 = vld [vmem:[%s6871_s7] sm:$0xff] }
  0x37   : > { %4142 = vmatprep.subr.mxu0 %v570_v2  ;;  %4177 = vmatprep.subr.mxu1 %v602_v3  ;;  %v892_v44 = vld [vmem:[%s6871_s7 + $0x1f8] sm:$0xff]  ;;  %v891_v46 = vld [vmem:[%s6871_s7 + $0x1f0] sm:$0xff]  ;;  %v890_v48 = vld [vmem:[%s6871_s7 + $0x1e8] sm:$0xff]  ;;  %v6876_v2 = vlaneseq }
  0x38   : > { %4143 = vmatpush3.msra.mxu0 %v554_v4  ;;  %4178 = vmatpush3.msra.mxu1 %v586_v5  ;;  %v876_v45 = vld [vmem:[%s6871_s7 + $0x178] sm:$0xff]  ;;  %v875_v47 = vld [vmem:[%s6871_s7 + $0x170] sm:$0xff]  ;;  %v874_v49 = vld [vmem:[%s6871_s7 + $0x168] sm:$0xff] }
  0x39   : > { %4144 = vmatprep.subr.mxu0 %v569_v6  ;;  %4179 = vmatprep.subr.mxu1 %v601_v7  ;;  %v889_v50 = vld [vmem:[%s6871_s7 + $0x1e0] sm:$0xff]  ;;  %v888_v52 = vld [vmem:[%s6871_s7 + $0x1d8] sm:$0xff]  ;;  %v887_v54 = vld [vmem:[%s6871_s7 + $0x1d0] sm:$0xff]  ;;  %v5332_v5 = vshrl.u32 %v6876_v2, 7 }
  0x3a   : > { %4145 = vmatpush3.msra.mxu0 %v553_v8  ;;  %4180 = vmatpush3.msra.mxu1 %v585_v9  ;;  %v873_v51 = vld [vmem:[%s6871_s7 + $0x160] sm:$0xff]  ;;  %v872_v53 = vld [vmem:[%s6871_s7 + $0x158] sm:$0xff]  ;;  %v871_v55 = vld [vmem:[%s6871_s7 + $0x150] sm:$0xff] }
  0x3b   : > { %4763 = vset.pattern.permute.xlu0 %v4828_v13  ;;  %4764 = vset.pattern.permute.xlu1 %v4828_v13  ;;  %v886_v56 = vld [vmem:[%s6871_s7 + $0x1c8] sm:$0xff]  ;;  %v885_v58 = vld [vmem:[%s6871_s7 + $0x1c0] sm:$0xff]  ;;  %v884_v60 = vld [vmem:[%s6871_s7 + $0x1b8] sm:$0xff]  ;;  %6890 = vst [vmem:[#allocation7_spill] sm:$0xff] %v5332_v5  ;;  %v6878_v8 = vsub.s32 2, %v5332_v5  ;;  %v6880_v9 = vsub.s32 0, %v5332_v5 }
  0x3c   : > { %1050 = vperm.xlu0 %4763, %v860_v11   ;;  %1045 = vperm.xlu1 %4764, %v859_v12   ;;  %v870_v57 = vld [vmem:[%s6871_s7 + $0x148] sm:$0xff]  ;;  %v869_v59 = vld [vmem:[%s6871_s7 + $0x140] sm:$0xff]  ;;  %v868_v61 = vld [vmem:[%s6871_s7 + $0x138] sm:$0xff]  ;;  %v6879_v12 = vsub.s32 1, %v5332_v5  ;;  %v6877_v13 = vsub.s32 3, %v5332_v5 }
  0x3d   : > { %v883_v62 = vld [vmem:[%s6871_s7 + $0x1b0] sm:$0xff]  ;;  %v882_v0 = vld [vmem:[%s6871_s7 + $0x1a8] sm:$0xff]  ;;  %v881_v3 = vld [vmem:[%s6871_s7 + $0x1a0] sm:$0xff] }
  0x3e   : > { %v867_v63 = vld [vmem:[%s6871_s7 + $0x130] sm:$0xff]  ;;  %v866_v1 = vld [vmem:[%s6871_s7 + $0x128] sm:$0xff]  ;;  %v865_v4 = vld [vmem:[%s6871_s7 + $0x120] sm:$0xff] }
  0x3f   : > { %v880_v6 = vld [vmem:[%s6871_s7 + $0x198] sm:$0xff]  ;;  %v381_v11 = vld [vmem:[%s6867_s3] sm:$0xf] }
  0x40   : > { %970 = vperm.xlu0 %4763, %v844_v14   ;;  %965 = vperm.xlu1 %4764, %v843_v15   ;;  %v864_v7 = vld [vmem:[%s6871_s7 + $0x118] sm:$0xff]  ;;  %v879_v14 = vld [vmem:[%s6871_s7 + $0x190] sm:$0xff] }
  0x41   : > { %v863_v15 = vld [vmem:[%s6871_s7 + $0x110] sm:$0xff] }
  0x44   : > { %1040 = vperm.xlu0 %4763, %v858_v16   ;;  %960 = vperm.xlu1 %4764, %v842_v17   ;;  %v394_v16 = vrot.slane %v381_v11, %v6878_v8  ;;  %v386_v17 = vrot.slane %v381_v11, %v6880_v9 }
  0x48   : > { %1035 = vperm.xlu0 %4763, %v857_v18   ;;  %955 = vperm.xlu1 %4764, %v841_v19   ;;  %v390_v18 = vrot.slane %v381_v11, %v6879_v12  ;;  %v398_v19 = vrot.slane %v381_v11, %v6877_v13 }
  0x4c   : > { %1030 = vperm.xlu0 %4763, %v856_v20   ;;  %950 = vperm.xlu1 %4764, %v840_v21   ;;  %v878_v20 = vld [vmem:[%s6871_s7 + $0x188] sm:$0xff] }
  0x4d   : > { %v862_v21 = vld [vmem:[%s6871_s7 + $0x108] sm:$0xff] }
  0x50   : > { %1025 = vperm.xlu0 %4763, %v855_v22   ;;  %945 = vperm.xlu1 %4764, %v839_v23  }
  0x54   : > { %1020 = vperm.xlu0 %4763, %v854_v24   ;;  %940 = vperm.xlu1 %4764, %v838_v25  }
  0x58   : > { %1015 = vperm.xlu0 %4763, %v853_v26   ;;  %935 = vperm.xlu1 %4764, %v837_v27  }
  0x5c   : > { %1010 = vperm.xlu0 %4763, %v852_v28   ;;  %930 = vperm.xlu1 %4764, %v836_v29  }
  0x60   : > { %1005 = vperm.xlu0 %4763, %v851_v30   ;;  %925 = vperm.xlu1 %4764, %v835_v31   ;;  %v877_v30 = vld [vmem:[%s6871_s7 + $0x180] sm:$0xff] }
  0x61   : > { %v861_v31 = vld [vmem:[%s6871_s7 + $0x100] sm:$0xff] }
  0x64   : > { %1000 = vperm.xlu0 %4763, %v850_v32   ;;  %920 = vperm.xlu1 %4764, %v834_v33  }
  0x68   : > { %995 = vperm.xlu0 %4763, %v849_v34   ;;  %915 = vperm.xlu1 %4764, %v833_v35  }
  0x6c   : > { %990 = vperm.xlu0 %4763, %v848_v36   ;;  %910 = vperm.xlu1 %4764, %v832_v37   ;;  %v1859_v36 = vld [vmem:[%s6873_s9] sm:$0xff]  ;;  %v4007_v37 = vld [vmem:[%s6871_s7 + $0x2f8] sm:$0xff] }
  0x70   : > { %985 = vperm.xlu0 %4763, %v847_v38   ;;  %905 = vperm.xlu1 %4764, %v831_v39   ;;  %v3991_v38 = vld [vmem:[%s6871_s7 + $0x278] sm:$0xff]  ;;  %v4006_v39 = vld [vmem:[%s6871_s7 + $0x2f0] sm:$0xff] }
  0x74   : > { %980 = vperm.xlu0 %4763, %v846_v40   ;;  %900 = vperm.xlu1 %4764, %v830_v41   ;;  %v3990_v40 = vld [vmem:[%s6871_s7 + $0x270] sm:$0xff]  ;;  %v4005_v41 = vld [vmem:[%s6871_s7 + $0x2e8] sm:$0xff] }
  0x78   : > { %975 = vperm.xlu0 %4763, %v845_v42   ;;  %895 = vperm.xlu1 %4764, %v829_v43   ;;  %v3989_v42 = vld [vmem:[%s6871_s7 + $0x268] sm:$0xff]  ;;  %v4004_v43 = vld [vmem:[%s6871_s7 + $0x2e0] sm:$0xff] }
  0x7c   : > { %1210 = vperm.xlu0 %4763, %v892_v44   ;;  %1130 = vperm.xlu1 %4764, %v876_v45   ;;  %v3988_v44 = vld [vmem:[%s6871_s7 + $0x260] sm:$0xff]  ;;  %v4003_v45 = vld [vmem:[%s6871_s7 + $0x2d8] sm:$0xff] }
  0x80   : > { %1205 = vperm.xlu0 %4763, %v891_v46   ;;  %1125 = vperm.xlu1 %4764, %v875_v47   ;;  %v3987_v46 = vld [vmem:[%s6871_s7 + $0x258] sm:$0xff]  ;;  %v4002_v47 = vld [vmem:[%s6871_s7 + $0x2d0] sm:$0xff] }
  0x84   : > { %1200 = vperm.xlu0 %4763, %v890_v48   ;;  %1120 = vperm.xlu1 %4764, %v874_v49   ;;  %v3986_v48 = vld [vmem:[%s6871_s7 + $0x250] sm:$0xff]  ;;  %v4001_v49 = vld [vmem:[%s6871_s7 + $0x2c8] sm:$0xff] }
  0x88   : > { %1195 = vperm.xlu0 %4763, %v889_v50   ;;  %1115 = vperm.xlu1 %4764, %v873_v51   ;;  %v3985_v50 = vld [vmem:[%s6871_s7 + $0x248] sm:$0xff]  ;;  %v765_v51 = vld [vmem:[%s6870_s6] sm:$0xff] }
  0x8c   : > { %1190 = vperm.xlu0 %4763, %v888_v52   ;;  %1110 = vperm.xlu1 %4764, %v872_v53   ;;  %v4000_v52 = vld [vmem:[%s6871_s7 + $0x2c0] sm:$0xff] }
  0x8d   : > { %v3984_v53 = vld [vmem:[%s6871_s7 + $0x240] sm:$0xff] }
  0x90   : > { %1185 = vperm.xlu0 %4763, %v887_v54   ;;  %1105 = vperm.xlu1 %4764, %v871_v55   ;;  %v3999_v54 = vld [vmem:[%s6871_s7 + $0x2b8] sm:$0xff] }
  0x91   : > { %v3983_v55 = vld [vmem:[%s6871_s7 + $0x238] sm:$0xff] }
  0x94   : > { %1180 = vperm.xlu0 %4763, %v886_v56   ;;  %1100 = vperm.xlu1 %4764, %v870_v57   ;;  %v3998_v56 = vld [vmem:[%s6871_s7 + $0x2b0] sm:$0xff] }
  0x95   : > { %v3982_v57 = vld [vmem:[%s6871_s7 + $0x230] sm:$0xff] }
  0x98   : > { %1175 = vperm.xlu0 %4763, %v885_v58   ;;  %1095 = vperm.xlu1 %4764, %v869_v59   ;;  %v3997_v59 = vld [vmem:[%s6871_s7 + $0x2a8] sm:$0xff] }
  0x9c   : > { %1170 = vperm.xlu0 %4763, %v884_v60   ;;  %1090 = vperm.xlu1 %4764, %v868_v61   ;;  %v3981_v61 = vld [vmem:[%s6871_s7 + $0x228] sm:$0xff] }
  0xa0   : > { %1165 = vperm.xlu0 %4763, %v883_v62   ;;  %1085 = vperm.xlu1 %4764, %v867_v63   ;;  %v3996_v62 = vld [vmem:[%s6871_s7 + $0x2a0] sm:$0xff] }
  0xa4   : > { %1160 = vperm.xlu0 %4763, %v882_v0   ;;  %1080 = vperm.xlu1 %4764, %v866_v1   ;;  %v3980_v1 = vld [vmem:[%s6871_s7 + $0x220] sm:$0xff] }
  0xa8   : > { %1155 = vperm.xlu0 %4763, %v881_v3   ;;  %1075 = vperm.xlu1 %4764, %v865_v4   ;;  %v3995_v3 = vld [vmem:[%s6871_s7 + $0x298] sm:$0xff] }
  0xa9   : > { %v3979_v4 = vld [vmem:[%s6871_s7 + $0x218] sm:$0xff] }
  0xac   : > { %1150 = vperm.xlu0 %4763, %v880_v6   ;;  %1070 = vperm.xlu1 %4764, %v864_v7   ;;  %v3994_v7 = vld [vmem:[%s6871_s7 + $0x290] sm:$0xff] }
  0xb0   : > { %1145 = vperm.xlu0 %4763, %v879_v14   ;;  %1065 = vperm.xlu1 %4764, %v863_v15   ;;  %v3978_v14 = vld [vmem:[%s6871_s7 + $0x210] sm:$0xff]  ;;  %v3993_v15 = vld [vmem:[%s6871_s7 + $0x288] sm:$0xff] }
  0xb4   : > { %1140 = vperm.xlu0 %4763, %v878_v20   ;;  %1060 = vperm.xlu1 %4764, %v862_v21   ;;  %v3976_v20 = vld [vmem:[%s6871_s7 + $0x200] sm:$0xff] }
  0xb7   : > { %v5440_v58 = vpop.permute.xlu0 %1050  ;;  %v5445_v60 = vpop.permute.xlu1 %1045 }
  0xb8   : > { %1135 = vperm.xlu0 %4763, %v877_v30   ;;  %1055 = vperm.xlu1 %4764, %v861_v31   ;;  %v4021_v30 = vld [vmem:[%s6871_s7 + $0x368] sm:$0xff] }
  0xbb   : > { %v5453_v63 = vpop.permute.xlu0 %970  ;;  %v5455_v0 = vpop.permute.xlu1 %965 }
  0xbc   : > { %1862 = vperm.xlu0 %4763, %v1859_v36   ;;  %2688 = vperm.xlu1 %4764, %v4007_v37  }
  0xbf   : > { %v5466_v6 = vpop.permute.xlu0 %1040  ;;  %v5471_v11 = vpop.permute.xlu1 %960 }
  0xc0   : > { %2608 = vperm.xlu0 %4763, %v3991_v38   ;;  %2683 = vperm.xlu1 %4764, %v4006_v39   ;;  %v4019_v38 = vld [vmem:[%s6871_s7 + $0x358] sm:$0xff]  ;;  %v4034_v39 = vld [vmem:[%s6871_s7 + $0x3d0] sm:$0xff] }
  0xc4   : > { %2603 = vperm.xlu0 %4763, %v3990_v40   ;;  %2678 = vperm.xlu1 %4764, %v4005_v41   ;;  %v4018_v40 = vld [vmem:[%s6871_s7 + $0x350] sm:$0xff] }
  0xc8   : > { %2598 = vperm.xlu0 %4763, %v3989_v42   ;;  %2673 = vperm.xlu1 %4764, %v4004_v43   ;;  %v4033_v42 = vld [vmem:[%s6871_s7 + $0x3c8] sm:$0xff] }
  0xcc   : > { %2593 = vperm.xlu0 %4763, %v3988_v44   ;;  %2668 = vperm.xlu1 %4764, %v4003_v45   ;;  %v4017_v44 = vld [vmem:[%s6871_s7 + $0x348] sm:$0xff]  ;;  %v4032_v45 = vld [vmem:[%s6871_s7 + $0x3c0] sm:$0xff] }
  0xd0   : > { %2588 = vperm.xlu0 %4763, %v3987_v46   ;;  %2663 = vperm.xlu1 %4764, %v4002_v47  }
  0xd4   : > { %2583 = vperm.xlu0 %4763, %v3986_v48   ;;  %2658 = vperm.xlu1 %4764, %v4001_v49   ;;  %v4016_v48 = vld [vmem:[%s6871_s7 + $0x340] sm:$0xff]  ;;  %v4031_v49 = vld [vmem:[%s6871_s7 + $0x3b8] sm:$0xff] }
  0xd8   : > { %2578 = vperm.xlu0 %4763, %v3985_v50   ;;  %2653 = vperm.xlu1 %4764, %v4000_v52   ;;  %v4015_v50 = vld [vmem:[%s6871_s7 + $0x338] sm:$0xff]  ;;  %v4030_v52 = vld [vmem:[%s6871_s7 + $0x3b0] sm:$0xff] }
  0xdb   : > { %v473_v22 = vpop.f32.mrf.mxu0  ;;  %v544_v23 = vpop.f32.mrf.mxu1 }
  0xdc   : > { %v545_v24 = vadd.f32 %v544_v23, %v394_v16  ;;  %v474_v25 = vadd.f32 %v473_v22, %v386_v17  ;;  %2573 = vperm.xlu0 %4763, %v3984_v53   ;;  %2648 = vperm.xlu1 %4764, %v3999_v54   ;;  %v5479_v16 = vpop.permute.xlu0 %1035  ;;  %v5481_v17 = vpop.permute.xlu1 %955  ;;  %v4039_v22 = vld [vmem:[%s6871_s7 + $0x3f8] sm:$0xff]  ;;  %v4014_v54 = vld [vmem:[%s6871_s7 + $0x330] sm:$0xff] }
  0xdd   : > { %v475_v26 = vpop.f32.mrf.mxu0  ;;  %v546_v27 = vpop.f32.mrf.mxu1 }
  0xde   : > { %v476_v28 = vadd.f32 %v475_v26, %v390_v18  ;;  %v547_v29 = vadd.f32 %v546_v27, %v398_v19  ;;  %v551_v32 = vmax.f32 %v545_v24, 0.0  ;;  %v549_v35 = vmax.f32 %v474_v25, 0.0  ;;  %v3977_v18 = vld [vmem:[%s6871_s7 + $0x208] sm:$0xff]  ;;  %v3992_v19 = vld [vmem:[%s6871_s7 + $0x280] sm:$0xff]  ;;  %v4023_v24 = vld [vmem:[%s6871_s7 + $0x378] sm:$0xff] }
  0xdf   : > { %v4038_v25 = vld [vmem:[%s6871_s7 + $0x3f0] sm:$0xff] }
  0xe0   : > { %v550_v33 = vmax.f32 %v476_v28, 0.0  ;;  %v552_v34 = vmax.f32 %v547_v29, 0.0  ;;  %2568 = vperm.xlu0 %4763, %v3983_v55   ;;  %2643 = vperm.xlu1 %4764, %v3998_v56   ;;  %v5492_v21 = vpop.permute.xlu0 %1030  ;;  %v5497_v23 = vpop.permute.xlu1 %950  ;;  %v4022_v28 = vld [vmem:[%s6871_s7 + $0x370] sm:$0xff]  ;;  %v4037_v29 = vld [vmem:[%s6871_s7 + $0x3e8] sm:$0xff] }
  0xe1   : > { %v4029_v55 = vld [vmem:[%s6871_s7 + $0x3a8] sm:$0xff] }
  0xe2   : > { %688 = vmatprep.mubr.f32.mxu0 %v550_v33  ;;  %758 = vmatprep.mubr.f32.mxu1 %v552_v34  ;;  %v4020_v34 = vld [vmem:[%s6871_s7 + $0x360] sm:$0xff] }
  0xe3   : > { %689 = vmatmul.mubr.f32.vlgmr.msra.gmra.mxu0 %v549_v35  ;;  %759 = vmatmul.mubr.f32.vlgmr.msra.gmra.mxu1 %v551_v32  ;;  %v4036_v32 = vld [vmem:[%s6871_s7 + $0x3e0] sm:$0xff]  ;;  %v4035_v35 = vld [vmem:[%s6871_s7 + $0x3d8] sm:$0xff] }
  0xe4   : > { %4526 = vmatprep.mubr.msk.f32.mxu0 %vm1213_vm1, %v765_v51  ;;  %2563 = vperm.xlu0 %4763, %v3982_v57   ;;  %v5505_v26 = vpop.permute.xlu0 %1025  ;;  %v5507_v27 = vpop.permute.xlu1 %945 }
  0xe5   : > { %2638 = vperm.xlu1 %4764, %v3997_v59   ;;  %v4013_v59 = vld [vmem:[%s6871_s7 + $0x328] sm:$0xff] }
  0xe8   : > { %2558 = vperm.xlu0 %4763, %v3981_v61   ;;  %v5518_v31 = vpop.permute.xlu0 %1020  ;;  %v5523_v33 = vpop.permute.xlu1 %940  ;;  %v4028_v61 = vld [vmem:[%s6871_s7 + $0x3a0] sm:$0xff] }
  0xe9   : > { %2633 = vperm.xlu1 %4764, %v3996_v62   ;;  %v4012_v62 = vld [vmem:[%s6871_s7 + $0x320] sm:$0xff] }
  0xec   : > { %2553 = vperm.xlu0 %4763, %v3980_v1   ;;  %v5531_v36 = vpop.permute.xlu0 %1015  ;;  %v5533_v37 = vpop.permute.xlu1 %935 }
  0xed   : > { %2628 = vperm.xlu1 %4764, %v3995_v3   ;;  %v4027_v3 = vld [vmem:[%s6871_s7 + $0x398] sm:$0xff] }
  0xf0   : > { %2548 = vperm.xlu0 %4763, %v3979_v4   ;;  %v5544_v41 = vpop.permute.xlu0 %1010  ;;  %v5549_v43 = vpop.permute.xlu1 %930 }
  0xf1   : > { %2623 = vperm.xlu1 %4764, %v3994_v7   ;;  %v4011_v7 = vld [vmem:[%s6871_s7 + $0x318] sm:$0xff] }
  0xf4   : > { %2543 = vperm.xlu0 %4763, %v3978_v14   ;;  %v5557_v46 = vpop.permute.xlu0 %1005  ;;  %v5559_v47 = vpop.permute.xlu1 %925  ;;  %v4026_v14 = vld [vmem:[%s6871_s7 + $0x390] sm:$0xff] }
  0xf5   : > { %2618 = vperm.xlu1 %4764, %v3993_v15  }
  0xf8   : > { %2538 = vperm.xlu0 %4763, %v3977_v18   ;;  %v5570_v51 = vpop.permute.xlu0 %1000  ;;  %v5575_v53 = vpop.permute.xlu1 %920 }
  0xf9   : > { %2613 = vperm.xlu1 %4764, %v3992_v19   ;;  %v4010_v19 = vld [vmem:[%s6871_s7 + $0x310] sm:$0xff] }
  0xfc   : > { %2533 = vperm.xlu0 %4763, %v3976_v20   ;;  %v5583_v56 = vpop.permute.xlu0 %995  ;;  %v5585_v57 = vpop.permute.xlu1 %915  ;;  %v4025_v20 = vld [vmem:[%s6871_s7 + $0x388] sm:$0xff] }
  0xfd   : > { %2848 = vperm.xlu1 %4764, %v4039_v22   ;;  %v4009_v22 = vld [vmem:[%s6871_s7 + $0x308] sm:$0xff] }
 0x100   : > { %2768 = vperm.xlu0 %4763, %v4023_v24   ;;  %v5596_v1 = vpop.permute.xlu0 %990  ;;  %v5601_v4 = vpop.permute.xlu1 %910 }
 0x101   : > { %2843 = vperm.xlu1 %4764, %v4038_v25   ;;  %v4024_v25 = vld [vmem:[%s6871_s7 + $0x380] sm:$0xff] }
 0x104   : > { %2763 = vperm.xlu0 %4763, %v4022_v28   ;;  %v5609_v15 = vpop.permute.xlu0 %985  ;;  %v5611_v18 = vpop.permute.xlu1 %905 }
 0x105   : > { %2838 = vperm.xlu1 %4764, %v4037_v29   ;;  %6891 = vst [vmem:[#allocation8_spill] sm:$0xff] %v5611_v18  ;;  %v4008_v29 = vld [vmem:[%s6871_s7 + $0x300] sm:$0xff] }
 0x108   : > { %2758 = vperm.xlu0 %4763, %v4021_v30   ;;  %v5622_v24 = vpop.permute.xlu0 %980  ;;  %v5627_v28 = vpop.permute.xlu1 %900  ;;  %v4108_v30 = vld [vmem:[%s6873_s9 + $0x8] sm:$0xff] }
 0x109   : > { %2833 = vperm.xlu1 %4764, %v4036_v32   ;;  %6892 = vst [vmem:[#allocation9_spill] sm:$0xff] %v5622_v24  ;;  %6893 = vst [vmem:[#allocation10_spill] sm:$0xff] %v5627_v28 }
 0x10c   : > { %2753 = vperm.xlu0 %4763, %v4020_v34   ;;  %v5635_v32 = vpop.permute.xlu0 %975  ;;  %v5637_v34 = vpop.permute.xlu1 %895 }
 0x10d   : > { %2828 = vperm.xlu1 %4764, %v4035_v35   ;;  %6894 = vst [vmem:[#allocation11_spill] sm:$0xff] %v5635_v32  ;;  %6895 = vst [vmem:[#allocation12_spill] sm:$0xff] %v5637_v34 }
 0x110   : > { %2748 = vperm.xlu0 %4763, %v4019_v38   ;;  %v5931_v34 = vpop.permute.xlu0 %1210 }
 0x111   : > { %2823 = vperm.xlu1 %4764, %v4034_v39   ;;  %v3770_v39 = vld [vmem:[%s6869_s5] ss:$0 sm:$0xff] }
 0x114   : > { %2743 = vperm.xlu0 %4763, %v4018_v40  }
 0x115   : > { %2818 = vperm.xlu1 %4764, %v4033_v42  }
 0x118   : > { %2738 = vperm.xlu0 %4763, %v4017_v44  }
 0x119   : > { %2813 = vperm.xlu1 %4764, %v4032_v45  }
 0x11c   : > { %2733 = vperm.xlu0 %4763, %v4016_v48  }
 0x11d   : > { %2808 = vperm.xlu1 %4764, %v4031_v49  }
 0x120   : > { %2728 = vperm.xlu0 %4763, %v4015_v50  }
 0x121   : > { %2803 = vperm.xlu1 %4764, %v4030_v52   ;;  %v766_v52 = vld [vmem:[%s6870_s6 + $0x8] sm:$0xff] }
 0x124   : > { %2723 = vperm.xlu0 %4763, %v4014_v54   ;;  %v767_v54 = vld [vmem:[%s6870_s6 + $0x10] sm:$0xff] }
 0x125   : > { %2798 = vperm.xlu1 %4764, %v4029_v55   ;;  %v768_v55 = vld [vmem:[%s6870_s6 + $0x18] sm:$0xff] }
 0x128   : > { %2718 = vperm.xlu0 %4763, %v4013_v59   ;;  %v769_v59 = vld [vmem:[%s6870_s6 + $0x20] sm:$0xff] }
 0x129   : > { %2793 = vperm.xlu1 %4764, %v4028_v61   ;;  %v770_v61 = vld [vmem:[%s6870_s6 + $0x28] sm:$0xff] }
 0x12c   : > { %2713 = vperm.xlu0 %4763, %v4012_v62   ;;  %v771_v62 = vld [vmem:[%s6870_s6 + $0x30] sm:$0xff] }
 0x12d   : > { %2788 = vperm.xlu1 %4764, %v4027_v3   ;;  %v772_v3 = vld [vmem:[%s6870_s6 + $0x38] sm:$0xff] }
 0x130   : > { %2708 = vperm.xlu0 %4763, %v4011_v7   ;;  %v773_v7 = vld [vmem:[%s6870_s6 + $0x40] sm:$0xff] }
 0x131   : > { %2783 = vperm.xlu1 %4764, %v4026_v14   ;;  %v774_v14 = vld [vmem:[%s6870_s6 + $0x48] sm:$0xff] }
 0x134   : > { %2703 = vperm.xlu0 %4763, %v4010_v19   ;;  %v775_v19 = vld [vmem:[%s6870_s6 + $0x50] sm:$0xff] }
 0x135   : > { %2778 = vperm.xlu1 %4764, %v4025_v20   ;;  %v776_v20 = vld [vmem:[%s6870_s6 + $0x58] sm:$0xff] }
 0x138   : > { %2698 = vperm.xlu0 %4763, %v4009_v22   ;;  %v777_v22 = vld [vmem:[%s6870_s6 + $0x60] sm:$0xff] }
 0x139   : > { %2773 = vperm.xlu1 %4764, %v4024_v25   ;;  %v778_v25 = vld [vmem:[%s6870_s6 + $0x68] sm:$0xff] }
 0x13c   : > { %2693 = vperm.xlu0 %4763, %v4008_v29   ;;  %v779_v29 = vld [vmem:[%s6870_s6 + $0x70] sm:$0xff] }
 0x13d   : > { %3501 = vperm.xlu1 %4764, %v4108_v30   ;;  %v780_v30 = vld [vmem:[%s6870_s6 + $0x78] sm:$0xff] }
 0x1a3   : > { %v4146_v35 = vpop.f32.mrf.mxu0  ;;  %v4181_v38 = vpop.f32.mrf.mxu1 }
 0x1a5   : > { %v4147_v40 = vpop.f32.mrf.mxu0  ;;  %v4182_v42 = vpop.f32.mrf.mxu1 }
 0x1a6   : > { %v4148_v44 = vadd.f32 %v4147_v40, %v4146_v35  ;;  %v4183_v48 = vadd.f32 %v4182_v42, %v4181_v38  ;;  %v781_v35 = vld [vmem:[%s6870_s6 + $0x80] sm:$0xff]  ;;  %v782_v38 = vld [vmem:[%s6870_s6 + $0x88] sm:$0xff]  ;;  %v784_v40 = vld [vmem:[%s6870_s6 + $0x98] sm:$0xff] }
 0x1a7   : > { %v785_v42 = vld [vmem:[%s6870_s6 + $0xa0] sm:$0xff] }
 0x1a8   : > { %v691_v45 = vadd.f32 %v4148_v44, %v3770_v39  ;;  %v783_v39 = vld [vmem:[%s6870_s6 + $0x90] sm:$0xff]  ;;  %v786_v44 = vld [vmem:[%s6870_s6 + $0xa8] sm:$0xff] }
 0x1aa   : > { %v761_v49 = vadd.f32 %v4183_v48, %v691_v45  ;;  %v787_v45 = vld [vmem:[%s6870_s6 + $0xb0] sm:$0xff]  ;;  %v788_v48 = vld [vmem:[%s6870_s6 + $0xb8] sm:$0xff] }
 0x1ac   : > { %v764_v50 = vmax.f32 %v761_v49, 0.0  ;;  %v789_v49 = vld [vmem:[%s6870_s6 + $0xc0] sm:$0xff] }
 0x1ae   : > { %4524 = vmatprep.subr.mxu0 %v764_v50 }
 0x1af   : > { %4525 = vmatpush3.msra.mxu0 %v764_v50  ;;  %v790_v50 = vld [vmem:[%s6870_s6 + $0xc8] sm:$0xff] }
 0x1b0   : > { %4527 = vmatmul.mubr.msk.f32.vlgmr.msra.gmra.mxu0 %vm1213_vm1, %v766_v52  ;;  %v791_v52 = vld [vmem:[%s6870_s6 + $0xd0] sm:$0xff] }
 0x1b1   : > { %4529 = vmatprep.mubr.msk.f32.mxu0 %vm1213_vm1, %v767_v54  ;;  %v792_v54 = vld [vmem:[%s6870_s6 + $0xd8] sm:$0xff] }
 0x1b4   : > { %4530 = vmatmul.mubr.msk.f32.gmra.mxu0 %vm1213_vm1, %v768_v55  ;;  %v793_v55 = vld [vmem:[%s6870_s6 + $0xe0] sm:$0xff] }
 0x1b5   : > { %4532 = vmatprep.mubr.msk.f32.mxu0 %vm1213_vm1, %v769_v59  ;;  %v794_v59 = vld [vmem:[%s6870_s6 + $0xe8] sm:$0xff] }
 0x1b8   : > { %4533 = vmatmul.mubr.msk.f32.gmra.mxu0 %vm1213_vm1, %v770_v61  ;;  %v795_v61 = vld [vmem:[%s6870_s6 + $0xf0] sm:$0xff] }
 0x1b9   : > { %4535 = vmatprep.mubr.msk.f32.mxu0 %vm1213_vm1, %v771_v62  ;;  %v796_v62 = vld [vmem:[%s6870_s6 + $0xf8] sm:$0xff] }
 0x1bc   : > { %4536 = vmatmul.mubr.msk.f32.gmra.mxu0 %vm1213_vm1, %v772_v3  ;;  %v797_v3 = vld [vmem:[%s6870_s6 + $0x100] sm:$0xff] }
 0x1bd   : > { %4538 = vmatprep.mubr.msk.f32.mxu0 %vm1213_vm1, %v773_v7  ;;  %v798_v7 = vld [vmem:[%s6870_s6 + $0x108] sm:$0xff] }
 0x1c0   : > { %4539 = vmatmul.mubr.msk.f32.gmra.mxu0 %vm1213_vm1, %v774_v14  ;;  %v799_v14 = vld [vmem:[%s6870_s6 + $0x110] sm:$0xff] }
 0x1c1   : > { %4541 = vmatprep.mubr.msk.f32.mxu0 %vm1213_vm1, %v775_v19  ;;  %v800_v19 = vld [vmem:[%s6870_s6 + $0x118] sm:$0xff] }
 0x1c4   : > { %4542 = vmatmul.mubr.msk.f32.gmra.mxu0 %vm1213_vm1, %v776_v20  ;;  %v801_v20 = vld [vmem:[%s6870_s6 + $0x120] sm:$0xff] }
 0x1c5   : > { %4544 = vmatprep.mubr.msk.f32.mxu0 %vm1213_vm1, %v777_v22  ;;  %v802_v22 = vld [vmem:[%s6870_s6 + $0x128] sm:$0xff] }
 0x1c8   : > { %4545 = vmatmul.mubr.msk.f32.gmra.mxu0 %vm1213_vm1, %v778_v25  ;;  %v803_v25 = vld [vmem:[%s6870_s6 + $0x130] sm:$0xff] }
 0x1c9   : > { %4547 = vmatprep.mubr.msk.f32.mxu0 %vm1213_vm1, %v779_v29  ;;  %v804_v29 = vld [vmem:[%s6870_s6 + $0x138] sm:$0xff] }
 0x1cc   : > { %4548 = vmatmul.mubr.msk.f32.gmra.mxu0 %vm1213_vm1, %v780_v30  ;;  %v805_v30 = vld [vmem:[%s6870_s6 + $0x140] sm:$0xff] }
 0x1cd   : > { %4550 = vmatprep.mubr.msk.f32.mxu0 %vm1213_vm1, %v781_v35  ;;  %v806_v35 = vld [vmem:[%s6870_s6 + $0x148] sm:$0xff] }
 0x1d0   : > { %4551 = vmatmul.mubr.msk.f32.gmra.mxu0 %vm1213_vm1, %v782_v38  ;;  %v807_v38 = vld [vmem:[%s6870_s6 + $0x150] sm:$0xff] }
 0x1d1   : > { %4553 = vmatprep.mubr.msk.f32.mxu0 %vm1213_vm1, %v783_v39  ;;  %v808_v39 = vld [vmem:[%s6870_s6 + $0x158] sm:$0xff] }
 0x1d4   : > { %4554 = vmatmul.mubr.msk.f32.gmra.mxu0 %vm1213_vm1, %v784_v40  ;;  %v809_v40 = vld [vmem:[%s6870_s6 + $0x160] sm:$0xff] }
 0x1d5   : > { %4556 = vmatprep.mubr.msk.f32.mxu0 %vm1213_vm1, %v785_v42  ;;  %v810_v42 = vld [vmem:[%s6870_s6 + $0x168] sm:$0xff] }
 0x1d8   : > { %4557 = vmatmul.mubr.msk.f32.gmra.mxu0 %vm1213_vm1, %v786_v44  ;;  %v811_v44 = vld [vmem:[%s6870_s6 + $0x170] sm:$0xff] }
 0x1d9   : > { %4559 = vmatprep.mubr.msk.f32.mxu0 %vm1213_vm1, %v787_v45  ;;  %v812_v45 = vld [vmem:[%s6870_s6 + $0x178] sm:$0xff] }
 0x1dc   : > { %4560 = vmatmul.mubr.msk.f32.gmra.mxu0 %vm1213_vm1, %v788_v48  ;;  %v813_v48 = vld [vmem:[%s6870_s6 + $0x180] sm:$0xff] }
 0x1dd   : > { %4562 = vmatprep.mubr.msk.f32.mxu0 %vm1213_vm1, %v789_v49  ;;  %v814_v49 = vld [vmem:[%s6870_s6 + $0x188] sm:$0xff] }
 0x1e0   : > { %4563 = vmatmul.mubr.msk.f32.gmra.mxu0 %vm1213_vm1, %v790_v50  ;;  %v815_v50 = vld [vmem:[%s6870_s6 + $0x190] sm:$0xff] }
 0x1e1   : > { %4565 = vmatprep.mubr.msk.f32.mxu0 %vm1213_vm1, %v791_v52  ;;  %v816_v52 = vld [vmem:[%s6870_s6 + $0x198] sm:$0xff] }
 0x1e4   : > { %4566 = vmatmul.mubr.msk.f32.gmra.mxu0 %vm1213_vm1, %v792_v54  ;;  %v817_v54 = vld [vmem:[%s6870_s6 + $0x1a0] sm:$0xff] }
 0x1e5   : > { %4568 = vmatprep.mubr.msk.f32.mxu0 %vm1213_vm1, %v793_v55  ;;  %v818_v55 = vld [vmem:[%s6870_s6 + $0x1a8] sm:$0xff] }
 0x1e8   : > { %4569 = vmatmul.mubr.msk.f32.gmra.mxu0 %vm1213_vm1, %v794_v59  ;;  %v819_v59 = vld [vmem:[%s6870_s6 + $0x1b0] sm:$0xff] }
 0x1e9   : > { %4571 = vmatprep.mubr.msk.f32.mxu0 %vm1213_vm1, %v795_v61  ;;  %v820_v61 = vld [vmem:[%s6870_s6 + $0x1b8] sm:$0xff] }
 0x1ec   : > { %4572 = vmatmul.mubr.msk.f32.gmra.mxu0 %vm1213_vm1, %v796_v62  ;;  %v821_v62 = vld [vmem:[%s6870_s6 + $0x1c0] sm:$0xff] }
 0x1ed   : > { %4574 = vmatprep.mubr.msk.f32.mxu0 %vm1213_vm1, %v797_v3  ;;  %v822_v3 = vld [vmem:[%s6870_s6 + $0x1c8] sm:$0xff] }
 0x1f0   : > { %4575 = vmatmul.mubr.msk.f32.gmra.mxu0 %vm1213_vm1, %v798_v7  ;;  %v823_v7 = vld [vmem:[%s6870_s6 + $0x1d0] sm:$0xff] }
 0x1f1   : > { %4577 = vmatprep.mubr.msk.f32.mxu0 %vm1213_vm1, %v799_v14  ;;  %v824_v14 = vld [vmem:[%s6870_s6 + $0x1d8] sm:$0xff] }
 0x1f4   : > { %4578 = vmatmul.mubr.msk.f32.gmra.mxu0 %vm1213_vm1, %v800_v19  ;;  %v825_v19 = vld [vmem:[%s6870_s6 + $0x1e0] sm:$0xff] }
 0x1f5   : > { %4580 = vmatprep.mubr.msk.f32.mxu0 %vm1213_vm1, %v801_v20  ;;  %v826_v20 = vld [vmem:[%s6870_s6 + $0x1e8] sm:$0xff] }
 0x1f8   : > { %4581 = vmatmul.mubr.msk.f32.gmra.mxu0 %vm1213_vm1, %v802_v22  ;;  %v827_v22 = vld [vmem:[%s6870_s6 + $0x1f0] sm:$0xff] }
 0x1f9   : > { %4583 = vmatprep.mubr.msk.f32.mxu0 %vm1213_vm1, %v803_v25  ;;  %v828_v25 = vld [vmem:[%s6870_s6 + $0x1f8] sm:$0xff] }
 0x1fc   : > { %4584 = vmatmul.mubr.msk.f32.gmra.mxu0 %vm1213_vm1, %v804_v29  ;;  %v1856_v29 = vld [vmem:[%s6872_s8 + $0x8] sm:$0xff] }
 0x1fd   : > { %4586 = vmatprep.mubr.msk.f32.mxu0 %vm1213_vm1, %v805_v30  ;;  %1929 = vmatprep.mubr.f32.mxu1 %v1856_v29 }
 0x200   : > { %4587 = vmatmul.mubr.msk.f32.gmra.mxu0 %vm1213_vm1, %v806_v35 }
 0x201   : > { %4589 = vmatprep.mubr.msk.f32.mxu0 %vm1213_vm1, %v807_v38 }
 0x204   : > { %4590 = vmatmul.mubr.msk.f32.gmra.mxu0 %vm1213_vm1, %v808_v39 }
 0x205   : > { %4592 = vmatprep.mubr.msk.f32.mxu0 %vm1213_vm1, %v809_v40 }
 0x208   : > { %4593 = vmatmul.mubr.msk.f32.gmra.mxu0 %vm1213_vm1, %v810_v42 }
 0x209   : > { %4595 = vmatprep.mubr.msk.f32.mxu0 %vm1213_vm1, %v811_v44 }
 0x20c   : > { %4596 = vmatmul.mubr.msk.f32.gmra.mxu0 %vm1213_vm1, %v812_v45 }
 0x20d   : > { %4598 = vmatprep.mubr.msk.f32.mxu0 %vm1213_vm1, %v813_v48 }
 0x210   : > { %4599 = vmatmul.mubr.msk.f32.gmra.mxu0 %vm1213_vm1, %v814_v49 }
 0x211   : > { %4601 = vmatprep.mubr.msk.f32.mxu0 %vm1213_vm1, %v815_v50 }
 0x214   : > { %4602 = vmatmul.mubr.msk.f32.gmra.mxu0 %vm1213_vm1, %v816_v52 }
 0x215   : > { %4604 = vmatprep.mubr.msk.f32.mxu0 %vm1213_vm1, %v817_v54 }
 0x218   : > { %4605 = vmatmul.mubr.msk.f32.gmra.mxu0 %vm1213_vm1, %v818_v55 }
 0x219   : > { %4607 = vmatprep.mubr.msk.f32.mxu0 %vm1213_vm1, %v819_v59 }
 0x21c   : > { %4608 = vmatmul.mubr.msk.f32.gmra.mxu0 %vm1213_vm1, %v820_v61 }
 0x21d   : > { %4610 = vmatprep.mubr.msk.f32.mxu0 %vm1213_vm1, %v821_v62 }
 0x220   : > { %4611 = vmatmul.mubr.msk.f32.gmra.mxu0 %vm1213_vm1, %v822_v3 }
 0x221   : > { %4613 = vmatprep.mubr.msk.f32.mxu0 %vm1213_vm1, %v823_v7 }
 0x224   : > { %4614 = vmatmul.mubr.msk.f32.gmra.mxu0 %vm1213_vm1, %v824_v14 }
 0x225   : > { %4616 = vmatprep.mubr.msk.f32.mxu0 %vm1213_vm1, %v825_v19 }
 0x228   : > { %4617 = vmatmul.mubr.msk.f32.gmra.mxu0 %vm1213_vm1, %v826_v20 }
 0x229   : > { %4619 = vmatprep.mubr.msk.f32.mxu0 %vm1213_vm1, %v827_v22 }
 0x22c   : > { %4620 = vmatmul.mubr.msk.f32.gmra.mxu0 %vm1213_vm1, %v828_v25 }
 0x270   : > { %v5897_v30 = vpop.f32.mrf.mxu0 }
 0x271   : > { %6896 = vst [vmem:[#allocation13_spill] sm:$0xff] %v5897_v30  ;;  %v5934_v30 = vpop.permute.xlu1 %1130 }
 0x272   : > { %v5899_v35 = vpop.f32.mrf.mxu0 }
 0x273   : > { %6897 = vst [vmem:[#allocation14_spill] sm:$0xff] %v5899_v35 }
 0x274   : > { %v5901_v38 = vpop.f32.mrf.mxu0 }
 0x276   : > { %v5903_v39 = vpop.f32.mrf.mxu0 }
 0x277   : > { %6898 = vst [vmem:[#allocation15_spill] sm:$0xff] %v5903_v39 }
 0x278   : > { %v5905_v40 = vpop.f32.mrf.mxu0 }
 0x27a   : > { %v5907_v42 = vpop.f32.mrf.mxu0 }
 0x27c   : > { %v5909_v44 = vpop.f32.mrf.mxu0 }
 0x27e   : > { %v5911_v45 = vpop.f32.mrf.mxu0 }
 0x280   : > { %v4540_v48 = vpop.f32.mrf.mxu0 }
 0x282   : > { %v5913_v49 = vpop.f32.mrf.mxu0 }
 0x284   : > { %v4543_v50 = vpop.f32.mrf.mxu0 }
 0x286   : > { %v1522_v52 = vpop.f32.mrf.mxu0 }
 0x288   : > { %v4546_v54 = vpop.f32.mrf.mxu0 }
 0x289   : > { %v1538_v39 = vadd.f32 %v4546_v54, %v5471_v11 }
 0x28a   : > { %v1532_v55 = vpop.f32.mrf.mxu0 }
 0x28b   : > { %v1804_v11 = vmax.f32 %v1538_v39, 0.0 }
 0x28c   : > { %v4549_v59 = vpop.f32.mrf.mxu0 }
 0x28d   : > { %v1548_v10 = vadd.f32 %v4549_v59, %v5453_v63 }
 0x28e   : > { %v1542_v61 = vpop.f32.mrf.mxu0 }
 0x28f   : > { %v1806_v18 = vmax.f32 %v1548_v10, 0.0  ;;  %v1528_v10 = vadd.f32 %v4543_v50, %v5497_v23  ;;  %v1518_v23 = vadd.f32 %v4540_v48, %v5523_v33 }
 0x290   : > { %v5915_v62 = vpop.f32.mrf.mxu0 }
 0x291   : > { %6899 = vst [vmem:[#allocation16_spill] sm:$0xff] %v5915_v62 }
 0x292   : > { %v5917_v3 = vpop.f32.mrf.mxu0 }
 0x293   : > { %6900 = vst [vmem:[#allocation17_spill] sm:$0xff] %v5917_v3  ;;  %v1543_v3 = vadd.f32 %v1542_v61, %v5455_v0  ;;  %v1503_v61 = vadd.f32 %v5911_v45, %v5559_v47 }
 0x294   : > { %v5919_v7 = vpop.f32.mrf.mxu0 }
 0x295   : > { %v1805_v0 = vmax.f32 %v1543_v3, 0.0 }
 0x296   : > { %v5921_v14 = vpop.f32.mrf.mxu0 }
 0x297   : > { %6901 = vst [vmem:[#allocation18_spill] sm:$0xff] %v5921_v14 }
 0x298   : > { %v5923_v19 = vpop.f32.mrf.mxu0 }
 0x29a   : > { %v5925_v20 = vpop.f32.mrf.mxu0 }
 0x29b   : > { %v1573_v47 = vadd.f32 %v5925_v20, %v5583_v56 }
 0x29c   : > { %v4561_v22 = vpop.f32.mrf.mxu0 }
 0x29d   : > { %v1588_v33 = vadd.f32 %v4561_v22, %v5544_v41  ;;  %v1578_v41 = vadd.f32 %v5923_v19, %v5570_v51  ;;  %v1498_v22 = vadd.f32 %v5905_v40, %v5575_v53  ;;  %v1493_v51 = vadd.f32 %v5907_v42, %v5585_v57 }
 0x29e   : > { %v5927_v25 = vpop.f32.mrf.mxu0  ;;  %v1797_v19 = vmax.f32 %v1503_v61, 0.0  ;;  %v1568_v53 = vadd.f32 %v5919_v7, %v5596_v1  ;;  %v6903_v56 = vld [vmem:[#allocation18_spill] sm:$0xff]  ;;  %v1811_v57 = vmax.f32 %v1573_v47, 0.0  ;;  %v1858_v47 = vld [vmem:[%s6872_s8 + $0x18] sm:$0xff] }
 0x29f   : > { %v1812_v40 = vmax.f32 %v1578_v41, 0.0  ;;  %v1563_v20 = vadd.f32 %v6903_v56, %v5609_v15  ;;  %v1795_v1 = vmax.f32 %v1493_v51, 0.0  ;;  %v6909_v15 = vld [vmem:[#allocation13_spill] sm:$0xff] }
 0x2a0   : > { %v4564_v29 = vpop.f32.mrf.mxu0 }
 0x2a2   : > { %v1592_v2 = vpop.f32.mrf.mxu0 }
 0x2a4   : > { %v4567_v13 = vpop.f32.mrf.mxu0 }
 0x2a6   : > { %v1602_v8 = vpop.f32.mrf.mxu0 }
 0x2a8   : > { %v4570_v12 = vpop.f32.mrf.mxu0 }
 0x2a9   : > { %v1618_v28 = vadd.f32 %v4570_v12, %v5466_v6  ;;  %v1608_v12 = vadd.f32 %v4567_v13, %v5492_v21  ;;  %v1598_v21 = vadd.f32 %v4564_v29, %v5518_v31 }
 0x2aa   : > { %v1612_v9 = vpop.f32.mrf.mxu0 }
 0x2ab   : > { %v1613_v63 = vadd.f32 %v1612_v9, %v5479_v16  ;;  %v1820_v6 = vmax.f32 %v1618_v28, 0.0  ;;  %v5951_v9 = vpop.permute.xlu1 %1125  ;;  %v1603_v16 = vadd.f32 %v1602_v8, %v5505_v26  ;;  %v1818_v28 = vmax.f32 %v1608_v12, 0.0  ;;  %v6904_v12 = vld [vmem:[#allocation8_spill] sm:$0xff] }
 0x2ac   : > { %v4573_v5 = vpop.f32.mrf.mxu0  ;;  %v1593_v8 = vadd.f32 %v1592_v2, %v5531_v36  ;;  %v1816_v48 = vmax.f32 %v1598_v21, 0.0  ;;  %v1508_v2 = vadd.f32 %v5909_v44, %v5549_v43  ;;  %v1800_v36 = vmax.f32 %v1518_v23, 0.0  ;;  %v6910_v23 = vld [vmem:[#allocation11_spill] sm:$0xff] }
 0x2ad   : > { %v1628_v35 = vadd.f32 %v4573_v5, %v5440_v58  ;;  %v1533_v58 = vadd.f32 %v1532_v55, %v5481_v17  ;;  %v1819_v17 = vmax.f32 %v1613_v63, 0.0  ;;  %v1817_v26 = vmax.f32 %v1603_v16, 0.0 }
 0x2ae   : > { %v1622_v32 = vpop.f32.mrf.mxu0  ;;  %v1814_v43 = vmax.f32 %v1588_v33, 0.0 }
 0x2af   : > { %v1822_v62 = vmax.f32 %v1628_v35, 0.0  ;;  %v1623_v24 = vadd.f32 %v1622_v32, %v5445_v60  ;;  %v5946_v60 = vpop.permute.xlu0 %1205  ;;  %v1802_v35 = vmax.f32 %v1528_v10, 0.0  ;;  %v5968_v31 = vpop.permute.xlu1 %1120 }
 0x2b0   : > { %v5939_v14 = vpop.f32.mrf.mxu0 }
 0x2b1   : > { %v1821_v5 = vmax.f32 %v1623_v24, 0.0  ;;  %4249 = vmatprep.subr.mxu1 %v1822_v62  ;;  %v1803_v24 = vmax.f32 %v1533_v58, 0.0  ;;  %v1796_v58 = vmax.f32 %v1498_v22, 0.0 }
 0x2b2   : > { %v5943_v59 = vpop.f32.mrf.mxu0  ;;  %4250 = vmatpush3.msra.mxu1 %v1806_v18  ;;  %v1523_v18 = vadd.f32 %v1522_v52, %v5507_v27  ;;  %v1513_v27 = vadd.f32 %v5913_v49, %v5533_v37  ;;  %v1583_v37 = vadd.f32 %v5927_v25, %v5557_v46  ;;  %v1815_v49 = vmax.f32 %v1593_v8, 0.0 }
 0x2b3   : > { %6902 = vst [vmem:[#allocation19_spill] sm:$0xff] %v5943_v59  ;;  %4251 = vmatprep.subr.mxu1 %v1821_v5  ;;  %v5962_v50 = vpop.permute.xlu0 %1200  ;;  %v1798_v46 = vmax.f32 %v1508_v2, 0.0  ;;  %v5989_v29 = vpop.permute.xlu1 %1115  ;;  %v1488_v5 = vadd.f32 %v5901_v38, %v5601_v4  ;;  %v6906_v4 = vld [vmem:[#allocation9_spill] sm:$0xff]  ;;  %v6907_v38 = vld [vmem:[#allocation16_spill] sm:$0xff] }
 0x2b4   : > { %v5949_v32 = vpop.f32.mrf.mxu0  ;;  %4252 = vmatpush3.msra.mxu1 %v1805_v0  ;;  %v1801_v52 = vmax.f32 %v1523_v18, 0.0  ;;  %v1799_v62 = vmax.f32 %v1513_v27, 0.0  ;;  %v1813_v45 = vmax.f32 %v1583_v37, 0.0  ;;  %v1558_v16 = vadd.f32 %v6907_v38, %v6906_v4  ;;  %v6908_v18 = vld [vmem:[#allocation10_spill] sm:$0xff]  ;;  %v6912_v27 = vld [vmem:[#allocation12_spill] sm:$0xff] }
 0x2b5   : > { %4253 = vmatprep.subr.mxu1 %v1820_v6  ;;  %v6905_v6 = vld [vmem:[#allocation15_spill] sm:$0xff]  ;;  %v1794_v21 = vmax.f32 %v1488_v5, 0.0 }
 0x2b6   : > { %v5955_v13 = vpop.f32.mrf.mxu0  ;;  %4254 = vmatpush3.msra.mxu1 %v1804_v11  ;;  %v1483_v10 = vadd.f32 %v6905_v6, %v6904_v12 }
 0x2b7   : > { %4255 = vmatprep.subr.mxu1 %v1819_v17  ;;  %v5983_v44 = vpop.permute.xlu0 %1195  ;;  %v6011_v11 = vpop.permute.xlu1 %1110  ;;  %v1810_v17 = vmax.f32 %v1568_v53, 0.0 }
 0x2b8   : > { %v5959_v39 = vpop.f32.mrf.mxu0  ;;  %4256 = vmatpush3.msra.mxu1 %v1803_v24  ;;  %v1478_v24 = vadd.f32 %v6909_v15, %v6908_v18 }
 0x2b9   : > { %4257 = vmatprep.subr.mxu1 %v1818_v28 }
 0x2ba   : > { %v5966_v54 = vpop.f32.mrf.mxu0  ;;  %4258 = vmatpush3.msra.mxu1 %v1802_v35  ;;  %v6911_v35 = vld [vmem:[#allocation17_spill] sm:$0xff] }
 0x2bb   : > { %4259 = vmatprep.subr.mxu1 %v1817_v26  ;;  %v6005_v42 = vpop.permute.xlu0 %1190  ;;  %v1553_v8 = vadd.f32 %v6911_v35, %v6910_v23  ;;  %v1809_v26 = vmax.f32 %v1563_v20, 0.0 }
 0x2bc   : > { %v5973_v55 = vpop.f32.mrf.mxu0  ;;  %4260 = vmatpush3.msra.mxu1 %v1801_v52  ;;  %v6913_v52 = vld [vmem:[#allocation14_spill] sm:$0xff] }
 0x2bd   : > { %4261 = vmatprep.subr.mxu1 %v1816_v48  ;;  %v1473_v33 = vadd.f32 %v6913_v52, %v6912_v27  ;;  %v1793_v48 = vmax.f32 %v1483_v10, 0.0  ;;  %v1807_v41 = vmax.f32 %v1553_v8, 0.0 }
 0x2be   : > { %v5979_v3 = vpop.f32.mrf.mxu0  ;;  %4262 = vmatpush3.msra.mxu1 %v1800_v36  ;;  %v1808_v36 = vmax.f32 %v1558_v16, 0.0 }
 0x2bf   : > { %4263 = vmatprep.subr.mxu1 %v1815_v49  ;;  %v6021_v37 = vpop.permute.xlu0 %1185  ;;  %v1792_v49 = vmax.f32 %v1478_v24, 0.0 }
 0x2c0   : > { %v5987_v25 = vpop.f32.mrf.mxu0  ;;  %4264 = vmatpush3.msra.mxu1 %v1799_v62  ;;  %v6023_v62 = vpop.permute.xlu1 %1105 }
 0x2c1   : > { %4265 = vmatprep.subr.mxu1 %v1814_v43  ;;  %v1791_v43 = vmax.f32 %v1473_v33, 0.0 }
 0x2c2   : > { %v5995_v63 = vpop.f32.mrf.mxu0  ;;  %4266 = vmatpush3.msra.mxu1 %v1798_v46  ;;  %v1855_v46 = vld [vmem:[%s6872_s8] sm:$0xff] }
 0x2c3   : > { %4267 = vmatprep.subr.mxu1 %v1813_v45  ;;  %v1181_v51 = vpop.permute.xlu0 %1180 }
 0x2c4   : > { %v6001_v0 = vpop.f32.mrf.mxu0  ;;  %4268 = vmatpush3.msra.mxu1 %v1797_v19  ;;  %v1101_v53 = vpop.permute.xlu1 %1100 }
 0x2c5   : > { %4269 = vmatprep.subr.mxu1 %v1812_v40 }
 0x2c6   : > { %v6009_v7 = vpop.f32.mrf.mxu0  ;;  %4270 = vmatpush3.msra.mxu1 %v1796_v58 }
 0x2c7   : > { %4271 = vmatprep.subr.mxu1 %v1811_v57  ;;  %v1176_v58 = vpop.permute.xlu0 %1175 }
 0x2c8   : > { %v4594_v28 = vpop.f32.mrf.mxu0  ;;  %4272 = vmatpush3.msra.mxu1 %v1795_v1  ;;  %v1096_v20 = vpop.permute.xlu1 %1095 }
 0x2c9   : > { %4273 = vmatprep.subr.mxu1 %v1810_v17 }
 0x2ca   : > { %v1692_v2 = vpop.f32.mrf.mxu0  ;;  %4274 = vmatpush3.msra.mxu1 %v1794_v21 }
 0x2cb   : > { %4275 = vmatprep.subr.mxu1 %v1809_v26  ;;  %v1171_v6 = vpop.permute.xlu0 %1170 }
 0x2cc   : > { %v4597_v61 = vpop.f32.mrf.mxu0  ;;  %4276 = vmatpush3.msra.mxu1 %v1793_v48  ;;  %v1091_v1 = vpop.permute.xlu1 %1090 }
 0x2cd   : > { %4277 = vmatprep.subr.mxu1 %v1808_v36  ;;  %v1708_v8 = vadd.f32 %v4597_v61, %v5934_v30  ;;  %v1693_v30 = vadd.f32 %v1692_v2, %v5989_v29 }
 0x2ce   : > { %v1702_v22 = vpop.f32.mrf.mxu0  ;;  %4278 = vmatpush3.msra.mxu1 %v1792_v49 }
 0x2cf   : > { %4279 = vmatprep.subr.mxu1 %v1807_v41  ;;  %v1166_v16 = vpop.permute.xlu0 %1165  ;;  %v1703_v52 = vadd.f32 %v1702_v22, %v5951_v9  ;;  %v1683_v22 = vadd.f32 %v6009_v7, %v6023_v62  ;;  %v1835_v29 = vmax.f32 %v1693_v30, 0.0  ;;  %v1668_v62 = vadd.f32 %v5973_v55, %v1091_v1 }
 0x2d0   : > { %v6031_v45 = vpop.f32.mrf.mxu0  ;;  %4280 = vmatpush3.msra.mxu1 %v1791_v43  ;;  %v1086_v18 = vpop.permute.xlu1 %1085  ;;  %v1698_v43 = vadd.f32 %v4594_v28, %v5968_v31 }
 0x2d1   : > { %1930 = vmatmul.mubr.f32.vlgmr.msra.gmra.mxu1 %v1855_v46  ;;  %v1838_v46 = vmax.f32 %v1708_v8, 0.0 }
 0x2d2   : > { %v6033_v19 = vpop.f32.mrf.mxu0  ;;  %1999 = vmatprep.mubr.f32.mxu1 %v1858_v47 }
 0x2d3   : > { %6914 = vst [vmem:[#allocation18_spill] sm:$0xff] %v6033_v19  ;;  %v1161_v21 = vpop.permute.xlu0 %1160 }
 0x2d4   : > { %v6035_v40 = vpop.f32.mrf.mxu0  ;;  %v1081_v35 = vpop.permute.xlu1 %1080 }
 0x2d6   : > { %v6037_v5 = vpop.f32.mrf.mxu0 }
 0x2d7   : > { %v1156_v41 = vpop.permute.xlu0 %1155 }
 0x2d8   : > { %v6039_v56 = vpop.f32.mrf.mxu0  ;;  %v1076_v47 = vpop.permute.xlu1 %1075 }
 0x2da   : > { %v6041_v57 = vpop.f32.mrf.mxu0 }
 0x2db   : > { %v1733_v55 = vadd.f32 %v6041_v57, %v1156_v41 }
 0x2dc   : > { %v4609_v12 = vpop.f32.mrf.mxu0  ;;  %v1071_v2 = vpop.permute.xlu1 %1070 }
 0x2de   : > { %v6043_v10 = vpop.f32.mrf.mxu0 }
 0x2e0   : > { %v4612_v4 = vpop.f32.mrf.mxu0 }
 0x2e2   : > { %v1752_v38 = vpop.f32.mrf.mxu0 }
 0x2e4   : > { %v4615_v17 = vpop.f32.mrf.mxu0 }
 0x2e5   : > { %v1768_v9 = vadd.f32 %v4615_v17, %v6005_v42 }
 0x2e6   : > { %v1762_v15 = vpop.f32.mrf.mxu0 }
 0x2e7   : > { %v1763_v31 = vadd.f32 %v1762_v15, %v6021_v37  ;;  %v1850_v42 = vmax.f32 %v1768_v9, 0.0  ;;  %v1833_v37 = vmax.f32 %v1683_v22, 0.0  ;;  %v1748_v15 = vadd.f32 %v4609_v12, %v1171_v6  ;;  %v3840_v9 = vld [vmem:[%s6866_s2 + $0x68] sm:$0xff]  ;;  %v3908_v22 = vld [vmem:[%s6868_s4 + $0x3f0] sm:$0xff] }
 0x2e8   : > { %v4618_v24 = vpop.f32.mrf.mxu0  ;;  %v1658_v12 = vadd.f32 %v5959_v39, %v1081_v35  ;;  %v1830_v6 = vmax.f32 %v1668_v62, 0.0  ;;  %v1843_v35 = vmax.f32 %v1733_v55, 0.0  ;;  %v3901_v62 = vld [vmem:[%s6868_s4 + $0x3b8] sm:$0xff]  ;;  %v3880_v55 = vld [vmem:[%s6868_s4 + $0x310] sm:$0xff] }
 0x2e9   : > { %v1778_v48 = vadd.f32 %v4618_v24, %v5962_v50  ;;  %v1836_v50 = vmax.f32 %v1698_v43, 0.0  ;;  %v1758_v24 = vadd.f32 %v4612_v4, %v1181_v51  ;;  %v1066_v4 = vpop.permute.xlu1 %1065 }
 0x2ea   : > { %v1772_v23 = vpop.f32.mrf.mxu0  ;;  %v1643_v57 = vadd.f32 %v5955_v13, %v1066_v4  ;;  %v3900_v4 = vld [vmem:[%s6868_s4 + $0x3b0] sm:$0xff] }
 0x2eb   : > { %v1773_v59 = vadd.f32 %v1772_v23, %v5983_v44  ;;  %v1852_v61 = vmax.f32 %v1778_v48, 0.0  ;;  %v1151_v44 = vpop.permute.xlu0 %1150  ;;  %v1848_v23 = vmax.f32 %v1758_v24, 0.0  ;;  %v3891_v24 = vld [vmem:[%s6868_s4 + $0x368] sm:$0xff] }
 0x2ec   : > { %v4621_v26 = vpop.f32.mrf.mxu0 }
 0x2ed   : > { %v1788_v27 = vadd.f32 %v4621_v26, %v5931_v34  ;;  %v1837_v34 = vmax.f32 %v1703_v52, 0.0  ;;  %v1851_v28 = vmax.f32 %v1773_v59, 0.0  ;;  %v1673_v59 = vadd.f32 %v5995_v63, %v1096_v20 }
 0x2ee   : > { %v1782_v33 = vpop.f32.mrf.mxu0  ;;  %v1738_v63 = vadd.f32 %v6039_v56, %v1161_v21  ;;  %v1846_v20 = vmax.f32 %v1748_v15, 0.0  ;;  %v1648_v56 = vadd.f32 %v5949_v32, %v1071_v2  ;;  %v1828_v21 = vmax.f32 %v1658_v12, 0.0  ;;  %v3907_v2 = vld [vmem:[%s6868_s4 + $0x3e8] sm:$0xff]  ;;  %v3881_v12 = vld [vmem:[%s6868_s4 + $0x318] sm:$0xff] }
 0x2ef   : > { %v1854_v36 = vmax.f32 %v1788_v27, 0.0  ;;  %v1783_v49 = vadd.f32 %v1782_v33, %v5946_v60  ;;  %v1688_v60 = vadd.f32 %v6001_v0, %v6011_v11  ;;  %v1753_v0 = vadd.f32 %v1752_v38, %v1176_v58  ;;  %v1146_v7 = vpop.permute.xlu0 %1145  ;;  %v3887_v15 = vld [vmem:[%s6868_s4 + $0x348] sm:$0xff] }
 0x2f0   : > { %v1849_v11 = vmax.f32 %v1763_v31, 0.0  ;;  %v1663_v58 = vadd.f32 %v5979_v3, %v1086_v18  ;;  %v1831_v38 = vmax.f32 %v1673_v59, 0.0  ;;  %v1061_v3 = vpop.permute.xlu1 %1060  ;;  %v1728_v18 = vadd.f32 %v6035_v40, %v1151_v44  ;;  %v3842_v31 = vld [vmem:[%s6866_s2 + $0x78] sm:$0xff]  ;;  %v3888_v59 = vld [vmem:[%s6868_s4 + $0x350] sm:$0xff] }
 0x2f1   : > { %v1853_v19 = vmax.f32 %v1783_v49, 0.0  ;;  %4284 = vmatprep.subr.mxu1 %v1854_v36  ;;  %v1834_v17 = vmax.f32 %v1688_v60, 0.0  ;;  %v1844_v26 = vmax.f32 %v1738_v63, 0.0  ;;  %v1723_v39 = vadd.f32 %v6037_v5, %v1146_v7  ;;  %v6915_v36 = vld [vmem:[#allocation18_spill] sm:$0xff]  ;;  %v6916_v5 = vld [vmem:[#allocation19_spill] sm:$0xff]  ;;  %v3893_v44 = vld [vmem:[%s6868_s4 + $0x378] sm:$0xff] }
 0x2f2   : > { %4285 = vmatpush3.msra.mxu1 %v1838_v46  ;;  %v1842_v52 = vmax.f32 %v1728_v18, 0.0  ;;  %v1638_v40 = vadd.f32 %v5939_v14, %v1061_v3  ;;  %v1826_v48 = vmax.f32 %v1648_v56, 0.0  ;;  %v1825_v46 = vmax.f32 %v1643_v57, 0.0  ;;  %v1857_v14 = vld [vmem:[%s6872_s8 + $0x10] sm:$0xff]  ;;  %v3836_v60 = vld [vmem:[%s6866_s2 + $0x48] sm:$0xff]  ;;  %v3886_v7 = vld [vmem:[%s6868_s4 + $0x340] sm:$0xff] }
 0x2f3   : > { %4286 = vmatprep.subr.mxu1 %v1853_v19  ;;  %v1678_v19 = vadd.f32 %v5987_v25, %v1101_v53  ;;  %v1743_v25 = vadd.f32 %v6043_v10, %v1166_v16  ;;  %v1847_v53 = vmax.f32 %v1753_v0, 0.0  ;;  %v1141_v8 = vpop.permute.xlu0 %1140  ;;  %v1653_v10 = vadd.f32 %v5966_v54, %v1076_v47  ;;  %v3889_v0 = vld [vmem:[%s6868_s4 + $0x358] sm:$0xff]  ;;  %v3882_v63 = vld [vmem:[%s6868_s4 + $0x320] sm:$0xff] }
 0x2f4   : > { %4287 = vmatpush3.msra.mxu1 %v1837_v34  ;;  %v1829_v16 = vmax.f32 %v1663_v58, 0.0  ;;  %v1718_v54 = vadd.f32 %v6031_v45, %v1141_v8  ;;  %v1056_v32 = vpop.permute.xlu1 %1055  ;;  %v1841_v41 = vmax.f32 %v1723_v39, 0.0  ;;  %v1824_v47 = vmax.f32 %v1638_v40, 0.0  ;;  %v3883_v58 = vld [vmem:[%s6868_s4 + $0x328] sm:$0xff]  ;;  %v3861_v40 = vld [vmem:[%s6868_s4 + $0x278] sm:$0xff] }
 0x2f5   : > { %4288 = vmatprep.subr.mxu1 %v1852_v61  ;;  %v1832_v51 = vmax.f32 %v1678_v19, 0.0  ;;  %v1845_v1 = vmax.f32 %v1743_v25, 0.0  ;;  %v1827_v27 = vmax.f32 %v1653_v10, 0.0  ;;  %v1633_v43 = vadd.f32 %v6916_v5, %v1056_v32  ;;  %v3839_v61 = vld [vmem:[%s6866_s2 + $0x60] sm:$0xff]  ;;  %v3884_v25 = vld [vmem:[%s6868_s4 + $0x330] sm:$0xff]  ;;  %v3879_v8 = vld [vmem:[%s6868_s4 + $0x308] sm:$0xff] }
 0x2f6   : > { %4289 = vmatpush3.msra.mxu1 %v1836_v50  ;;  %v1840_v13 = vmax.f32 %v1718_v54, 0.0  ;;  %v6917_v34 = vmov 0.0   ;;  %v3835_v50 = vld [vmem:[%s6866_s2 + $0x40] sm:$0xff]  ;;  %v3838_v54 = vld [vmem:[%s6866_s2 + $0x58] sm:$0xff]  ;;  %v3860_v32 = vld [vmem:[%s6868_s4 + $0x270] sm:$0xff] }
 0x2f7   : > { %4290 = vmatprep.subr.mxu1 %v1851_v28  ;;  %v1136_v33 = vpop.permute.xlu0 %1135  ;;  %v1823_v30 = vmax.f32 %v1633_v43, 0.0  ;;  %v3909_v28 = vld [vmem:[%s6868_s4 + $0x3f8] sm:$0xff]  ;;  %v3890_v19 = vld [vmem:[%s6868_s4 + $0x360] sm:$0xff] }
 0x2f8   : > { %4291 = vmatpush3.msra.mxu1 %v1835_v29  ;;  %v1713_v49 = vadd.f32 %v6915_v36, %v1136_v33  ;;  %4354 = vmatprep.subr.mxu0 %v3909_v28  ;;  %v3892_v29 = vld [vmem:[%s6868_s4 + $0x370] sm:$0xff]  ;;  %v3877_v33 = vld [vmem:[%s6868_s4 + $0x2f8] sm:$0xff]  ;;  %v3875_v36 = vld [vmem:[%s6868_s4 + $0x2e8] sm:$0xff] }
 0x2f9   : > { %4292 = vmatprep.subr.mxu1 %v1850_v42  ;;  %4355 = vmatpush3.msra.mxu0 %v3893_v44  ;;  %v3906_v42 = vld [vmem:[%s6868_s4 + $0x3e0] sm:$0xff]  ;;  %v3873_v43 = vld [vmem:[%s6868_s4 + $0x2d8] sm:$0xff]  ;;  %v3867_v28 = vld [vmem:[%s6868_s4 + $0x2a8] sm:$0xff] }
 0x2fa   : > { %4293 = vmatpush3.msra.mxu1 %v1834_v17  ;;  %v1839_v45 = vmax.f32 %v1713_v49, 0.0  ;;  %4356 = vmatprep.subr.mxu0 %v3908_v22  ;;  %v3905_v17 = vld [vmem:[%s6868_s4 + $0x3d8] sm:$0xff]  ;;  %v3859_v49 = vld [vmem:[%s6868_s4 + $0x268] sm:$0xff]  ;;  %v3858_v5 = vld [vmem:[%s6868_s4 + $0x260] sm:$0xff] }
 0x2fb   : > { %4294 = vmatprep.subr.mxu1 %v1849_v11  ;;  %4357 = vmatpush3.msra.mxu0 %v3892_v29  ;;  %v3904_v11 = vld [vmem:[%s6868_s4 + $0x3d0] sm:$0xff]  ;;  %v3851_v44 = vld [vmem:[%s6868_s4 + $0x228] sm:$0xff]  ;;  %v3866_v22 = vld [vmem:[%s6868_s4 + $0x2a0] sm:$0xff] }
 0x2fc   : > { %4295 = vmatpush3.msra.mxu1 %v1833_v37  ;;  %4358 = vmatprep.subr.mxu0 %v3907_v2  ;;  %v3903_v37 = vld [vmem:[%s6868_s4 + $0x3c8] sm:$0xff]  ;;  %v3850_v29 = vld [vmem:[%s6868_s4 + $0x220] sm:$0xff]  ;;  %v3865_v2 = vld [vmem:[%s6868_s4 + $0x298] sm:$0xff] }
 0x2fd   : > { %4296 = vmatprep.subr.mxu1 %v1848_v23  ;;  %4359 = vmatpush3.msra.mxu0 %v3891_v24  ;;  %v3902_v23 = vld [vmem:[%s6868_s4 + $0x3c0] sm:$0xff]  ;;  %v3849_v24 = vld [vmem:[%s6868_s4 + $0x218] sm:$0xff] }
 0x2fe   : > { %4297 = vmatpush3.msra.mxu1 %v1832_v51  ;;  %4360 = vmatprep.subr.mxu0 %v3906_v42  ;;  %v3885_v51 = vld [vmem:[%s6868_s4 + $0x338] sm:$0xff]  ;;  %v3864_v42 = vld [vmem:[%s6868_s4 + $0x290] sm:$0xff] }
 0x2ff   : > { %4298 = vmatprep.subr.mxu1 %v1847_v53  ;;  %4361 = vmatpush3.msra.mxu0 %v3890_v19  ;;  %v3899_v53 = vld [vmem:[%s6868_s4 + $0x3a8] sm:$0xff]  ;;  %v3848_v19 = vld [vmem:[%s6868_s4 + $0x210] sm:$0xff] }
 0x300   : > { %4299 = vmatpush3.msra.mxu1 %v1831_v38  ;;  %4362 = vmatprep.subr.mxu0 %v3905_v17  ;;  %v3898_v38 = vld [vmem:[%s6868_s4 + $0x3a0] sm:$0xff]  ;;  %v3863_v17 = vld [vmem:[%s6868_s4 + $0x288] sm:$0xff] }
 0x301   : > { %4300 = vmatprep.subr.mxu1 %v1846_v20  ;;  %4363 = vmatpush3.msra.mxu0 %v3889_v0  ;;  %v3897_v20 = vld [vmem:[%s6868_s4 + $0x398] sm:$0xff]  ;;  %v3847_v0 = vld [vmem:[%s6868_s4 + $0x208] sm:$0xff] }
 0x302   : > { %4301 = vmatpush3.msra.mxu1 %v1830_v6  ;;  %4364 = vmatprep.subr.mxu0 %v3904_v11  ;;  %v3896_v6 = vld [vmem:[%s6868_s4 + $0x390] sm:$0xff]  ;;  %v3862_v11 = vld [vmem:[%s6868_s4 + $0x280] sm:$0xff] }
 0x303   : > { %4302 = vmatprep.subr.mxu1 %v1845_v1  ;;  %4365 = vmatpush3.msra.mxu0 %v3888_v59  ;;  %v3895_v1 = vld [vmem:[%s6868_s4 + $0x388] sm:$0xff]  ;;  %v3846_v59 = vld [vmem:[%s6868_s4 + $0x200] sm:$0xff] }
 0x304   : > { %4303 = vmatpush3.msra.mxu1 %v1829_v16  ;;  %4366 = vmatprep.subr.mxu0 %v3903_v37  ;;  %v3894_v37 = vld [vmem:[%s6868_s4 + $0x380] sm:$0xff] }
 0x305   : > { %4304 = vmatprep.subr.mxu1 %v1844_v26  ;;  %4367 = vmatpush3.msra.mxu0 %v3887_v15  ;;  %v1863_v26 = vpop.permute.xlu0 %1862  ;;  %v3878_v15 = vld [vmem:[%s6868_s4 + $0x300] sm:$0xff] }
 0x306   : > { %4305 = vmatpush3.msra.mxu1 %v1828_v21  ;;  %4368 = vmatprep.subr.mxu0 %v3902_v23  ;;  %v3843_v23 = vld [vmem:[%s6867_s3 + $0x4] sm:$0xf] }
 0x307   : > { %4306 = vmatprep.subr.mxu1 %v1843_v35  ;;  %4369 = vmatpush3.msra.mxu0 %v3886_v7  ;;  %v6918_v7 = vld [vmem:[#allocation7_spill] sm:$0xff] }
 0x308   : > { %4307 = vmatpush3.msra.mxu1 %v1827_v27  ;;  %4370 = vmatprep.subr.mxu0 %v3901_v62  ;;  %v3841_v27 = vld [vmem:[%s6866_s2 + $0x70] sm:$0xff]  ;;  %v6919_v62 = vsub.s32 0, %v6918_v7 }
 0x309   : > { %4308 = vmatprep.subr.mxu1 %v1842_v52  ;;  %4371 = vmatpush3.msra.mxu0 %v3885_v51  ;;  %v3837_v52 = vld [vmem:[%s6866_s2 + $0x50] sm:$0xff] }
 0x30a   : > { %4309 = vmatpush3.msra.mxu1 %v1826_v48  ;;  %4372 = vmatprep.subr.mxu0 %v3900_v4  ;;  %v3876_v48 = vld [vmem:[%s6868_s4 + $0x2f0] sm:$0xff]  ;;  %v2021_v51 = vrot.slane %v3843_v23, %v6919_v62  ;;  %v6920_v4 = vsub.s32 1, %v6918_v7  ;;  %v3945_v62 = vld [vmem:[%s6870_s6 + $0x308] sm:$0xff] }
 0x30b   : > { %4310 = vmatprep.subr.mxu1 %v1841_v41  ;;  %4373 = vmatpush3.msra.mxu0 %v3884_v25  ;;  %v3874_v41 = vld [vmem:[%s6868_s4 + $0x2e0] sm:$0xff] }
 0x30c   : > { %4311 = vmatpush3.msra.mxu1 %v1825_v46  ;;  %4374 = vmatprep.subr.mxu0 %v3899_v53  ;;  %v3857_v46 = vld [vmem:[%s6868_s4 + $0x258] sm:$0xff]  ;;  %v2025_v25 = vrot.slane %v3843_v23, %v6920_v4 }
 0x30d   : > { %4312 = vmatprep.subr.mxu1 %v1840_v13  ;;  %4375 = vmatpush3.msra.mxu0 %v3883_v58  ;;  %v3872_v13 = vld [vmem:[%s6868_s4 + $0x2d0] sm:$0xff]  ;;  %v3947_v4 = vld [vmem:[%s6870_s6 + $0x318] sm:$0xff] }
 0x30e   : > { %4313 = vmatpush3.msra.mxu1 %v1824_v47  ;;  %4376 = vmatprep.subr.mxu0 %v3898_v38  ;;  %v3856_v47 = vld [vmem:[%s6868_s4 + $0x250] sm:$0xff] }
 0x30f   : > { %4314 = vmatprep.subr.mxu1 %v1839_v45  ;;  %4377 = vmatpush3.msra.mxu0 %v3882_v63  ;;  %v3871_v45 = vld [vmem:[%s6868_s4 + $0x2c8] sm:$0xff]  ;;  %v6921_v63 = vsub.s32 2, %v6918_v7 }
 0x310   : > { %4315 = vmatpush3.msra.mxu1 %v1823_v30  ;;  %4378 = vmatprep.subr.mxu0 %v3897_v20  ;;  %v3855_v30 = vld [vmem:[%s6868_s4 + $0x248] sm:$0xff] }
 0x311   : > { %2000 = vmatmul.mubr.f32.vlgmr.msra.gmra.mxu1 %v1857_v14  ;;  %2069 = vmatprep.subr.mxu1 %v3840_v9  ;;  %v3870_v14 = vld [vmem:[%s6868_s4 + $0x2c0] sm:$0xff]  ;;  %v2029_v20 = vrot.slane %v3843_v23, %v6921_v63 }
 0x312   : > { %2105 = vmatprep.mubr.f32.mxu1 %v6917_v34  ;;  %2070 = vmatpush1.msra.mxu1 %v3839_v61  ;;  %v3854_v9 = vld [vmem:[%s6868_s4 + $0x240] sm:$0xff]  ;;  %v3869_v61 = vld [vmem:[%s6868_s4 + $0x2b8] sm:$0xff] }
 0x313   : > { %2071 = vmatprep.subr.mxu1 %v3836_v60  ;;  %4379 = vmatpush3.msra.mxu0 %v3881_v12  ;;  %v3853_v60 = vld [vmem:[%s6868_s4 + $0x238] sm:$0xff]  ;;  %v3952_v63 = vld [vmem:[%s6870_s6 + $0x340] sm:$0xff] }
 0x314   : > { %2072 = vmatpush1.msra.mxu1 %v3835_v50  ;;  %4380 = vmatprep.subr.mxu0 %v3896_v6  ;;  %v3868_v50 = vld [vmem:[%s6868_s4 + $0x2b0] sm:$0xff]  ;;  %v6922_v6 = vsub.s32 3, %v6918_v7  ;;  %v3944_v7 = vld [vmem:[%s6870_s6 + $0x300] sm:$0xff] }
 0x315   : > { %2140 = vmatprep.subr.mxu1 %v3842_v31  ;;  %4381 = vmatpush3.msra.mxu0 %v3880_v55  ;;  %v3852_v31 = vld [vmem:[%s6868_s4 + $0x230] sm:$0xff] }
 0x316   : > { %4382 = vmatprep.subr.mxu0 %v3895_v1  ;;  %v2033_v55 = vrot.slane %v3843_v23, %v6922_v6  ;;  %v3943_v23 = vld [vmem:[%s6870_s6 + $0x2f8] sm:$0xff] }
 0x317   : > { %4383 = vmatpush3.msra.mxu0 %v3879_v8  ;;  %v3955_v6 = vld [vmem:[%s6870_s6 + $0x358] sm:$0xff] }
 0x318   : > { %4384 = vmatprep.subr.mxu0 %v3894_v37  ;;  %v3942_v37 = vld [vmem:[%s6870_s6 + $0x2f0] sm:$0xff] }
 0x319   : > { %4385 = vmatpush3.msra.mxu0 %v3878_v15  ;;  %v3927_v15 = vld [vmem:[%s6870_s6 + $0x278] sm:$0xff] }
 0x391   : > { %v4281_v10 = vpop.f32.mrf.mxu1 }
 0x393   : > { %v4282_v16 = vpop.f32.mrf.mxu1 }
 0x394   : > { %v4283_v3 = vadd.f32 %v4282_v16, %v4281_v10 }
 0x396   : > { %v1932_v21 = vadd.f32 %v4283_v3, %v1863_v26 }
 0x3d1   : > { %v4316_v18 = vpop.f32.mrf.mxu1 }
 0x3d3   : > { %v4317_v56 = vpop.f32.mrf.mxu1 }
 0x3d4   : > { %v4318_v39 = vadd.f32 %v4317_v56, %v4316_v18 }
 0x3d6   : > { %v2002_v35 = vadd.f32 %v4318_v39, %v1932_v21  ;;  %v3912_v21 = vld [vmem:[%s6870_s6 + $0x200] sm:$0xff] }
 0x3d7   : > { %v3928_v39 = vld [vmem:[%s6870_s6 + $0x280] sm:$0xff] }
 0x3d8   : > { %v2005_v57 = vmax.f32 %v2002_v35, 0.0 }
 0x3da   : > { %3844 = vmatmul.mubr.msk.f32.vlgmr.msra.gmra.mxu1 %vm403_vm0, %v2005_v57 }
 0x3db   : > { %2141 = vmatpush1.msra.mxu1 %v3841_v27  ;;  %2176 = vmatprep.mubr.f32.mxu1 %v6917_v34 }
 0x3dc   : > { %2142 = vmatprep.subr.mxu1 %v3838_v54  ;;  %v3911_v54 = vld [vmem:[%s6869_s5 + $0x1] ss:$0 sm:$0xff] }
 0x3dd   : > { %2143 = vmatpush1.msra.mxu1 %v3837_v52 }
 0x3de   : > { %3845 = vmatmul.mubr.msk.f32.vlgmr.msra.gmra.mxu1 %vm403_vm0, %v2005_v57  ;;  %4319 = vmatprep.subr.mxu1 %v3877_v33 }
 0x3df   : > { %4320 = vmatpush3.msra.mxu1 %v3861_v40 }
 0x3e0   : > { %4321 = vmatprep.subr.mxu1 %v3876_v48 }
 0x3e1   : > { %4322 = vmatpush3.msra.mxu1 %v3860_v32 }
 0x3e2   : > { %4323 = vmatprep.subr.mxu1 %v3875_v36 }
 0x3e3   : > { %4324 = vmatpush3.msra.mxu1 %v3859_v49  ;;  %v3913_v49 = vld [vmem:[%s6870_s6 + $0x208] sm:$0xff] }
 0x3e4   : > { %4325 = vmatprep.subr.mxu1 %v3874_v41  ;;  %v3929_v41 = vld [vmem:[%s6870_s6 + $0x288] sm:$0xff] }
 0x3e5   : > { %4326 = vmatpush3.msra.mxu1 %v3858_v5  ;;  %v3914_v5 = vld [vmem:[%s6870_s6 + $0x210] sm:$0xff] }
 0x3e6   : > { %4327 = vmatprep.subr.mxu1 %v3873_v43  ;;  %v3930_v43 = vld [vmem:[%s6870_s6 + $0x290] sm:$0xff] }
 0x3e7   : > { %4328 = vmatpush3.msra.mxu1 %v3857_v46  ;;  %v3915_v46 = vld [vmem:[%s6870_s6 + $0x218] sm:$0xff] }
 0x3e8   : > { %4329 = vmatprep.subr.mxu1 %v3872_v13  ;;  %v3931_v13 = vld [vmem:[%s6870_s6 + $0x298] sm:$0xff] }
 0x3e9   : > { %4330 = vmatpush3.msra.mxu1 %v3856_v47  ;;  %v3916_v47 = vld [vmem:[%s6870_s6 + $0x220] sm:$0xff] }
 0x3ea   : > { %4331 = vmatprep.subr.mxu1 %v3871_v45  ;;  %v3932_v45 = vld [vmem:[%s6870_s6 + $0x2a0] sm:$0xff] }
 0x3eb   : > { %4332 = vmatpush3.msra.mxu1 %v3855_v30  ;;  %v3917_v30 = vld [vmem:[%s6870_s6 + $0x228] sm:$0xff] }
 0x3ec   : > { %4333 = vmatprep.subr.mxu1 %v3870_v14  ;;  %v3933_v14 = vld [vmem:[%s6870_s6 + $0x2a8] sm:$0xff] }
 0x3ed   : > { %4334 = vmatpush3.msra.mxu1 %v3854_v9  ;;  %v3918_v9 = vld [vmem:[%s6870_s6 + $0x230] sm:$0xff] }
 0x3ee   : > { %4335 = vmatprep.subr.mxu1 %v3869_v61  ;;  %v3934_v61 = vld [vmem:[%s6870_s6 + $0x2b0] sm:$0xff] }
 0x3ef   : > { %4336 = vmatpush3.msra.mxu1 %v3853_v60  ;;  %v3919_v60 = vld [vmem:[%s6870_s6 + $0x238] sm:$0xff] }
 0x3f0   : > { %4337 = vmatprep.subr.mxu1 %v3868_v50  ;;  %v3935_v50 = vld [vmem:[%s6870_s6 + $0x2b8] sm:$0xff] }
 0x3f1   : > { %4338 = vmatpush3.msra.mxu1 %v3852_v31  ;;  %v3920_v31 = vld [vmem:[%s6870_s6 + $0x240] sm:$0xff] }
 0x3f2   : > { %4339 = vmatprep.subr.mxu1 %v3867_v28  ;;  %v3936_v28 = vld [vmem:[%s6870_s6 + $0x2c0] sm:$0xff] }
 0x3f3   : > { %4340 = vmatpush3.msra.mxu1 %v3851_v44  ;;  %v3921_v44 = vld [vmem:[%s6870_s6 + $0x248] sm:$0xff] }
 0x3f4   : > { %4341 = vmatprep.subr.mxu1 %v3866_v22  ;;  %v3937_v22 = vld [vmem:[%s6870_s6 + $0x2c8] sm:$0xff] }
 0x3f5   : > { %4342 = vmatpush3.msra.mxu1 %v3850_v29  ;;  %v3922_v29 = vld [vmem:[%s6870_s6 + $0x250] sm:$0xff] }
 0x3f6   : > { %4343 = vmatprep.subr.mxu1 %v3865_v2  ;;  %v3938_v2 = vld [vmem:[%s6870_s6 + $0x2d0] sm:$0xff] }
 0x3f7   : > { %4344 = vmatpush3.msra.mxu1 %v3849_v24  ;;  %v3923_v24 = vld [vmem:[%s6870_s6 + $0x258] sm:$0xff] }
 0x3f8   : > { %4345 = vmatprep.subr.mxu1 %v3864_v42  ;;  %v3939_v42 = vld [vmem:[%s6870_s6 + $0x2d8] sm:$0xff] }
 0x3f9   : > { %4346 = vmatpush3.msra.mxu1 %v3848_v19  ;;  %v3924_v19 = vld [vmem:[%s6870_s6 + $0x260] sm:$0xff] }
 0x3fa   : > { %4347 = vmatprep.subr.mxu1 %v3863_v17  ;;  %v3940_v17 = vld [vmem:[%s6870_s6 + $0x2e0] sm:$0xff] }
 0x3fb   : > { %4348 = vmatpush3.msra.mxu1 %v3847_v0  ;;  %v3925_v0 = vld [vmem:[%s6870_s6 + $0x268] sm:$0xff] }
 0x3fc   : > { %4349 = vmatprep.subr.mxu1 %v3862_v11  ;;  %v3941_v11 = vld [vmem:[%s6870_s6 + $0x2e8] sm:$0xff] }
 0x3fd   : > { %4350 = vmatpush3.msra.mxu1 %v3846_v59  ;;  %v3926_v59 = vld [vmem:[%s6870_s6 + $0x270] sm:$0xff] }
 0x49a   : > { %v2107_v53 = vpop.f32.mrf.mxu1 }
 0x49b   : > { %v2108_v58 = vadd.f32 %v2107_v53, %v2021_v51  ;;  %v3946_v51 = vld [vmem:[%s6870_s6 + $0x310] sm:$0xff]  ;;  %v3949_v53 = vld [vmem:[%s6870_s6 + $0x328] sm:$0xff] }
 0x49c   : > { %v2109_v38 = vpop.f32.mrf.mxu1 }
 0x49d   : > { %v2110_v12 = vadd.f32 %v2109_v38, %v2025_v25  ;;  %v2183_v10 = vmax.f32 %v2108_v58, 0.0  ;;  %v3948_v25 = vld [vmem:[%s6870_s6 + $0x320] sm:$0xff]  ;;  %v3950_v58 = vld [vmem:[%s6870_s6 + $0x330] sm:$0xff]  ;;  %v3951_v38 = vld [vmem:[%s6870_s6 + $0x338] sm:$0xff] }
 0x49e   : > { %v2178_v1 = vpop.f32.mrf.mxu1 }
 0x49f   : > { %v2184_v8 = vmax.f32 %v2110_v12, 0.0  ;;  %v2179_v16 = vadd.f32 %v2178_v1, %v2029_v20  ;;  %v3953_v20 = vld [vmem:[%s6870_s6 + $0x348] sm:$0xff]  ;;  %v3954_v12 = vld [vmem:[%s6870_s6 + $0x350] sm:$0xff] }
 0x4a0   : > { %v2180_v3 = vpop.f32.mrf.mxu1  ;;  %v3957_v1 = vld [vmem:[%s6870_s6 + $0x368] sm:$0xff] }
 0x4a1   : > { %v2181_v18 = vadd.f32 %v2180_v3, %v2033_v55  ;;  %2324 = vmatprep.mubr.f32.mxu1 %v2184_v8  ;;  %v2185_v56 = vmax.f32 %v2179_v16, 0.0  ;;  %v3956_v55 = vld [vmem:[%s6870_s6 + $0x360] sm:$0xff]  ;;  %v3958_v8 = vld [vmem:[%s6870_s6 + $0x370] sm:$0xff]  ;;  %v3961_v3 = vld [vmem:[%s6870_s6 + $0x388] sm:$0xff] }
 0x4a2   : > { %2325 = vmatmul.mubr.f32.vlgmr.msra.gmra.mxu1 %v2183_v10  ;;  %v3959_v10 = vld [vmem:[%s6870_s6 + $0x378] sm:$0xff]  ;;  %v3960_v16 = vld [vmem:[%s6870_s6 + $0x380] sm:$0xff] }
 0x4a3   : > { %v2186_v26 = vmax.f32 %v2181_v18, 0.0  ;;  %4648 = vmatprep.mubr.msk.f32.mxu1 %vm1213_vm1, %v3928_v39  ;;  %v3962_v18 = vld [vmem:[%s6870_s6 + $0x390] sm:$0xff] }
 0x4a4   : > { %v3966_v39 = vld [vmem:[%s6870_s6 + $0x3b0] sm:$0xff] }
 0x4a5   : > { %2394 = vmatprep.mubr.f32.mxu0 %v2186_v26  ;;  %v3963_v26 = vld [vmem:[%s6870_s6 + $0x398] sm:$0xff] }
 0x4a6   : > { %2395 = vmatmul.mubr.f32.vlgmr.msra.gmra.mxu0 %v2185_v56  ;;  %v3964_v56 = vld [vmem:[%s6870_s6 + $0x3a0] sm:$0xff] }
 0x4a7   : > { %4624 = vmatprep.mubr.msk.f32.mxu0 %vm1213_vm1, %v3912_v21  ;;  %v3965_v21 = vld [vmem:[%s6870_s6 + $0x3a8] sm:$0xff] }
 0x562   : > { %v4351_v35 = vpop.f32.mrf.mxu1 }
 0x564   : > { %v4352_v57 = vpop.f32.mrf.mxu1 }
 0x565   : > { %v4353_v27 = vadd.f32 %v4352_v57, %v4351_v35  ;;  %v3967_v35 = vld [vmem:[%s6870_s6 + $0x3b8] sm:$0xff]  ;;  %v3968_v57 = vld [vmem:[%s6870_s6 + $0x3c0] sm:$0xff] }
 0x566   : > { %v4386_v52 = vpop.f32.mrf.mxu0 }
 0x567   : > { %v2327_v40 = vadd.f32 %v4353_v27, %v3911_v54  ;;  %v3969_v27 = vld [vmem:[%s6870_s6 + $0x3c8] sm:$0xff]  ;;  %v3970_v54 = vld [vmem:[%s6870_s6 + $0x3d0] sm:$0xff] }
 0x568   : > { %v4387_v33 = vpop.f32.mrf.mxu0 }
 0x569   : > { %v4388_v48 = vadd.f32 %v4387_v33, %v4386_v52  ;;  %v3971_v52 = vld [vmem:[%s6870_s6 + $0x3d8] sm:$0xff]  ;;  %v3972_v33 = vld [vmem:[%s6870_s6 + $0x3e0] sm:$0xff] }
 0x56b   : > { %v2397_v32 = vadd.f32 %v4388_v48, %v2327_v40  ;;  %v3973_v40 = vld [vmem:[%s6870_s6 + $0x3e8] sm:$0xff]  ;;  %v3974_v48 = vld [vmem:[%s6870_s6 + $0x3f0] sm:$0xff] }
 0x56d   : > { %v2400_v36 = vmax.f32 %v2397_v32, 0.0  ;;  %v3975_v32 = vld [vmem:[%s6870_s6 + $0x3f8] sm:$0xff] }
 0x56f   : > { %4622 = vmatprep.subr.mxu0 %v2400_v36  ;;  %4720 = vmatprep.subr.mxu1 %v2400_v36 }
 0x570   : > { %4623 = vmatpush3.msra.mxu0 %v2400_v36  ;;  %4721 = vmatpush3.msra.mxu1 %v2400_v36  ;;  %v6569_v36 = vpop.permute.xlu1 %2688 }
 0x571   : > { %4625 = vmatmul.mubr.msk.f32.vlgmr.msra.gmra.mxu0 %vm1213_vm1, %v3913_v49  ;;  %4649 = vmatmul.mubr.msk.f32.vlgmr.msra.gmra.mxu1 %vm1213_vm1, %v3929_v41  ;;  %v6571_v49 = vpop.permute.xlu0 %2608  ;;  %v4105_v41 = vld [vmem:[%s6872_s8 + $0x28] sm:$0xff] }
 0x572   : > { %4627 = vmatprep.mubr.msk.f32.mxu0 %vm1213_vm1, %v3914_v5  ;;  %4651 = vmatprep.mubr.msk.f32.mxu1 %vm1213_vm1, %v3930_v43 }
 0x574   : > { %v6576_v5 = vpop.permute.xlu1 %2683 }
 0x575   : > { %4628 = vmatmul.mubr.msk.f32.gmra.mxu0 %vm1213_vm1, %v3915_v46  ;;  %4652 = vmatmul.mubr.msk.f32.gmra.mxu1 %vm1213_vm1, %v3931_v13  ;;  %v6578_v43 = vpop.permute.xlu0 %2603 }
 0x576   : > { %4630 = vmatprep.mubr.msk.f32.mxu0 %vm1213_vm1, %v3916_v47  ;;  %4654 = vmatprep.mubr.msk.f32.mxu1 %vm1213_vm1, %v3932_v45 }
 0x578   : > { %v2679_v46 = vpop.permute.xlu1 %2678 }
 0x579   : > { %4631 = vmatmul.mubr.msk.f32.gmra.mxu0 %vm1213_vm1, %v3917_v30  ;;  %4655 = vmatmul.mubr.msk.f32.gmra.mxu1 %vm1213_vm1, %v3933_v14  ;;  %v6580_v13 = vpop.permute.xlu0 %2598 }
 0x57a   : > { %4633 = vmatprep.mubr.msk.f32.mxu0 %vm1213_vm1, %v3918_v9  ;;  %4657 = vmatprep.mubr.msk.f32.mxu1 %vm1213_vm1, %v3934_v61 }
 0x57c   : > { %v6582_v47 = vpop.permute.xlu1 %2673 }
 0x57d   : > { %4634 = vmatmul.mubr.msk.f32.gmra.mxu0 %vm1213_vm1, %v3919_v60  ;;  %4658 = vmatmul.mubr.msk.f32.gmra.mxu1 %vm1213_vm1, %v3935_v50  ;;  %v6584_v45 = vpop.permute.xlu0 %2593 }
 0x57e   : > { %4636 = vmatprep.mubr.msk.f32.mxu0 %vm1213_vm1, %v3920_v31  ;;  %4660 = vmatprep.mubr.msk.f32.mxu1 %vm1213_vm1, %v3936_v28 }
 0x580   : > { %v6586_v30 = vpop.permute.xlu1 %2668 }
 0x581   : > { %4637 = vmatmul.mubr.msk.f32.gmra.mxu0 %vm1213_vm1, %v3921_v44  ;;  %4661 = vmatmul.mubr.msk.f32.gmra.mxu1 %vm1213_vm1, %v3937_v22  ;;  %v6588_v14 = vpop.permute.xlu0 %2588 }
 0x582   : > { %4639 = vmatprep.mubr.msk.f32.mxu0 %vm1213_vm1, %v3922_v29  ;;  %4663 = vmatprep.mubr.msk.f32.mxu1 %vm1213_vm1, %v3938_v2 }
 0x584   : > { %v6590_v9 = vpop.permute.xlu1 %2663 }
 0x585   : > { %4640 = vmatmul.mubr.msk.f32.gmra.mxu0 %vm1213_vm1, %v3923_v24  ;;  %4664 = vmatmul.mubr.msk.f32.gmra.mxu1 %vm1213_vm1, %v3939_v42  ;;  %v6592_v61 = vpop.permute.xlu0 %2583 }
 0x586   : > { %4642 = vmatprep.mubr.msk.f32.mxu0 %vm1213_vm1, %v3924_v19  ;;  %4666 = vmatprep.mubr.msk.f32.mxu1 %vm1213_vm1, %v3940_v17 }
 0x588   : > { %v6594_v60 = vpop.permute.xlu1 %2658 }
 0x589   : > { %4643 = vmatmul.mubr.msk.f32.gmra.mxu0 %vm1213_vm1, %v3925_v0  ;;  %4667 = vmatmul.mubr.msk.f32.gmra.mxu1 %vm1213_vm1, %v3941_v11  ;;  %v6596_v50 = vpop.permute.xlu0 %2578 }
 0x58a   : > { %4645 = vmatprep.mubr.msk.f32.mxu0 %vm1213_vm1, %v3926_v59  ;;  %4669 = vmatprep.mubr.msk.f32.mxu1 %vm1213_vm1, %v3942_v37 }
 0x58c   : > { %v6598_v31 = vpop.permute.xlu1 %2653 }
 0x58d   : > { %4646 = vmatmul.mubr.msk.f32.gmra.mxu0 %vm1213_vm1, %v3927_v15  ;;  %4670 = vmatmul.mubr.msk.f32.gmra.mxu1 %vm1213_vm1, %v3943_v23  ;;  %v6600_v28 = vpop.permute.xlu0 %2573 }
 0x58e   : > { %4672 = vmatprep.mubr.msk.f32.mxu1 %vm1213_vm1, %v3944_v7  ;;  %3568 = vmatprep.mubr.f32.mxu0 %v4105_v41 }
 0x590   : > { %v6602_v44 = vpop.permute.xlu1 %2648 }
 0x591   : > { %4673 = vmatmul.mubr.msk.f32.gmra.mxu1 %vm1213_vm1, %v3945_v62  ;;  %v6604_v22 = vpop.permute.xlu0 %2568 }
 0x592   : > { %4675 = vmatprep.mubr.msk.f32.mxu1 %vm1213_vm1, %v3946_v51 }
 0x594   : > { %v6606_v29 = vpop.permute.xlu1 %2643 }
 0x595   : > { %4676 = vmatmul.mubr.msk.f32.gmra.mxu1 %vm1213_vm1, %v3947_v4  ;;  %v6608_v2 = vpop.permute.xlu0 %2563 }
 0x596   : > { %4678 = vmatprep.mubr.msk.f32.mxu1 %vm1213_vm1, %v3948_v25 }
 0x598   : > { %v6610_v24 = vpop.permute.xlu1 %2638 }
 0x599   : > { %4679 = vmatmul.mubr.msk.f32.gmra.mxu1 %vm1213_vm1, %v3949_v53  ;;  %v6612_v42 = vpop.permute.xlu0 %2558 }
 0x59a   : > { %4681 = vmatprep.mubr.msk.f32.mxu1 %vm1213_vm1, %v3950_v58 }
 0x59c   : > { %v6614_v19 = vpop.permute.xlu1 %2633 }
 0x59d   : > { %4682 = vmatmul.mubr.msk.f32.gmra.mxu1 %vm1213_vm1, %v3951_v38  ;;  %v6620_v11 = vpop.permute.xlu0 %2553 }
 0x59e   : > { %4684 = vmatprep.mubr.msk.f32.mxu1 %vm1213_vm1, %v3952_v63 }
 0x5a0   : > { %v6630_v7 = vpop.permute.xlu1 %2628 }
 0x5a1   : > { %4685 = vmatmul.mubr.msk.f32.gmra.mxu1 %vm1213_vm1, %v3953_v20  ;;  %v6636_v4 = vpop.permute.xlu0 %2548 }
 0x5a2   : > { %4687 = vmatprep.mubr.msk.f32.mxu1 %vm1213_vm1, %v3954_v12 }
 0x5a4   : > { %v6646_v63 = vpop.permute.xlu1 %2623 }
 0x5a5   : > { %4688 = vmatmul.mubr.msk.f32.gmra.mxu1 %vm1213_vm1, %v3955_v6  ;;  %v6652_v6 = vpop.permute.xlu0 %2543 }
 0x5a6   : > { %4690 = vmatprep.mubr.msk.f32.mxu1 %vm1213_vm1, %v3956_v55  ;;  %6929 = vst [vmem:[#allocation11_spill] sm:$0xff] %v6652_v6 }
 0x5a9   : > { %4691 = vmatmul.mubr.msk.f32.gmra.mxu1 %vm1213_vm1, %v3957_v1 }
 0x5aa   : > { %4693 = vmatprep.mubr.msk.f32.mxu1 %vm1213_vm1, %v3958_v8 }
 0x5ad   : > { %4694 = vmatmul.mubr.msk.f32.gmra.mxu1 %vm1213_vm1, %v3959_v10 }
 0x5ae   : > { %4696 = vmatprep.mubr.msk.f32.mxu1 %vm1213_vm1, %v3960_v16  ;;  %v6658_v16 = vpop.permute.xlu1 %2618 }
 0x5af   : > { %6930 = vst [vmem:[#allocation17_spill] sm:$0xff] %v6658_v16 }
 0x5b1   : > { %4697 = vmatmul.mubr.msk.f32.gmra.mxu1 %vm1213_vm1, %v3961_v3 }
 0x5b2   : > { %4699 = vmatprep.mubr.msk.f32.mxu1 %vm1213_vm1, %v3962_v18 }
 0x5b5   : > { %4700 = vmatmul.mubr.msk.f32.gmra.mxu1 %vm1213_vm1, %v3963_v26  ;;  %v6660_v26 = vpop.permute.xlu0 %2538 }
 0x5b6   : > { %4702 = vmatprep.mubr.msk.f32.mxu1 %vm1213_vm1, %v3964_v56  ;;  %6931 = vst [vmem:[#allocation12_spill] sm:$0xff] %v6660_v26 }
 0x5b9   : > { %4703 = vmatmul.mubr.msk.f32.gmra.mxu1 %vm1213_vm1, %v3965_v21 }
 0x5ba   : > { %4705 = vmatprep.mubr.msk.f32.mxu1 %vm1213_vm1, %v3966_v39 }
 0x5bd   : > { %4706 = vmatmul.mubr.msk.f32.gmra.mxu1 %vm1213_vm1, %v3967_v35 }
 0x5be   : > { %4708 = vmatprep.mubr.msk.f32.mxu1 %vm1213_vm1, %v3968_v57  ;;  %v6662_v57 = vpop.permute.xlu1 %2613 }
 0x5bf   : > { %6932 = vst [vmem:[#allocation14_spill] sm:$0xff] %v6662_v57 }
 0x5c1   : > { %4709 = vmatmul.mubr.msk.f32.gmra.mxu1 %vm1213_vm1, %v3969_v27 }
 0x5c2   : > { %4711 = vmatprep.mubr.msk.f32.mxu1 %vm1213_vm1, %v3970_v54  ;;  %v6666_v41 = vpop.permute.xlu1 %2848 }
 0x5c3   : > { %6934 = vst [vmem:[#allocation19_spill] sm:$0xff] %v6666_v41 }
 0x5c5   : > { %4712 = vmatmul.mubr.msk.f32.gmra.mxu1 %vm1213_vm1, %v3971_v52  ;;  %v6664_v52 = vpop.permute.xlu0 %2533 }
 0x5c6   : > { %4714 = vmatprep.mubr.msk.f32.mxu1 %vm1213_vm1, %v3972_v33  ;;  %6933 = vst [vmem:[#allocation18_spill] sm:$0xff] %v6664_v52 }
 0x5c9   : > { %4715 = vmatmul.mubr.msk.f32.gmra.mxu1 %vm1213_vm1, %v3973_v40 }
 0x5ca   : > { %4717 = vmatprep.mubr.msk.f32.mxu1 %vm1213_vm1, %v3974_v48 }
 0x5cd   : > { %4718 = vmatmul.mubr.msk.f32.gmra.mxu1 %vm1213_vm1, %v3975_v32 }
 0x631   : > { %v6616_v17 = vpop.f32.mrf.mxu0  ;;  %v6618_v0 = vpop.f32.mrf.mxu1 }
 0x632   : > { %6923 = vst [vmem:[#allocation8_spill] sm:$0xff] %v6616_v17  ;;  %6924 = vst [vmem:[#allocation15_spill] sm:$0xff] %v6618_v0  ;;  %v6670_v0 = vpop.permute.xlu0 %2768 }
 0x633   : > { %v6622_v59 = vpop.f32.mrf.mxu0  ;;  %v6624_v37 = vpop.f32.mrf.mxu1 }
 0x634   : > { %6925 = vst [vmem:[#allocation9_spill] sm:$0xff] %v6622_v59  ;;  %6926 = vst [vmem:[#allocation16_spill] sm:$0xff] %v6624_v37 }
 0x635   : > { %v6626_v15 = vpop.f32.mrf.mxu0  ;;  %v6628_v23 = vpop.f32.mrf.mxu1 }
 0x637   : > { %v6632_v62 = vpop.f32.mrf.mxu0  ;;  %v6634_v51 = vpop.f32.mrf.mxu1 }
 0x638   : > { %6927 = vst [vmem:[#allocation10_spill] sm:$0xff] %v6632_v62  ;;  %6928 = vst [vmem:[#allocation13_spill] sm:$0xff] %v6634_v51 }
 0x639   : > { %v6638_v25 = vpop.f32.mrf.mxu0  ;;  %v6640_v53 = vpop.f32.mrf.mxu1 }
 0x63b   : > { %v6642_v58 = vpop.f32.mrf.mxu0  ;;  %v6644_v38 = vpop.f32.mrf.mxu1 }
 0x63d   : > { %v6648_v20 = vpop.f32.mrf.mxu0  ;;  %v6650_v12 = vpop.f32.mrf.mxu1 }
 0x63f   : > { %v6654_v55 = vpop.f32.mrf.mxu0  ;;  %v6656_v1 = vpop.f32.mrf.mxu1 }
 0x641   : > { %v4638_v8 = vpop.f32.mrf.mxu0  ;;  %v4662_v10 = vpop.f32.mrf.mxu1 }
 0x643   : > { %v3149_v3 = vpop.f32.mrf.mxu0  ;;  %v3229_v18 = vpop.f32.mrf.mxu1 }
 0x645   : > { %v4641_v56 = vpop.f32.mrf.mxu0  ;;  %v4665_v21 = vpop.f32.mrf.mxu1 }
 0x647   : > { %v3159_v39 = vpop.f32.mrf.mxu0  ;;  %v3239_v35 = vpop.f32.mrf.mxu1 }
 0x649   : > { %v4644_v27 = vpop.f32.mrf.mxu0  ;;  %v4668_v54 = vpop.f32.mrf.mxu1 }
 0x64a   : > { %v3255_v37 = vadd.f32 %v4668_v54, %v2679_v46  ;;  %v3175_v6 = vadd.f32 %v4644_v27, %v6580_v13  ;;  %v3140_v54 = vadd.f32 %v6654_v55, %v6608_v2  ;;  %v3210_v2 = vadd.f32 %v6644_v38, %v6614_v19  ;;  %v6936_v19 = vld [vmem:[#allocation13_spill] sm:$0xff] }
 0x64b   : > { %v3169_v33 = vpop.f32.mrf.mxu0  ;;  %v3249_v40 = vpop.f32.mrf.mxu1  ;;  %v3200_v38 = vadd.f32 %v6936_v19, %v6646_v63  ;;  %v6942_v63 = vld [vmem:[#allocation8_spill] sm:$0xff] }
 0x64c   : > { %v3250_v41 = vadd.f32 %v3249_v40, %v6582_v47  ;;  %v3441_v13 = vmax.f32 %v3175_v6, 0.0  ;;  %v6687_v47 = vpop.permute.xlu0 %2763 }
 0x64d   : > { %v4647_v48 = vpop.f32.mrf.mxu0  ;;  %v4671_v32 = vpop.f32.mrf.mxu1 }
 0x64e   : > { %v3185_v34 = vadd.f32 %v4647_v48, %v6571_v49  ;;  %v3265_v59 = vadd.f32 %v4671_v32, %v6569_v36  ;;  %v3170_v36 = vadd.f32 %v3169_v33, %v6584_v45  ;;  %v3456_v45 = vmax.f32 %v3250_v41, 0.0 }
 0x64f   : > { %v3179_v17 = vpop.f32.mrf.mxu0  ;;  %v3259_v26 = vpop.f32.mrf.mxu1  ;;  %v3125_v41 = vadd.f32 %v6626_v15, %v6636_v4  ;;  %v6939_v15 = vld [vmem:[#allocation17_spill] sm:$0xff]  ;;  %v6940_v4 = vld [vmem:[#allocation15_spill] sm:$0xff] }
 0x650   : > { %v3443_v57 = vmax.f32 %v3185_v34, 0.0  ;;  %v3459_v16 = vmax.f32 %v3265_v59, 0.0  ;;  %v3180_v62 = vadd.f32 %v3179_v17, %v6578_v43  ;;  %v3260_v52 = vadd.f32 %v3259_v26, %v6576_v5  ;;  %v6682_v43 = vpop.permute.xlu1 %2843 }
 0x651   : > { %v6675_v51 = vpop.f32.mrf.mxu1  ;;  %v3245_v34 = vadd.f32 %v4665_v21, %v6586_v30  ;;  %v3457_v59 = vmax.f32 %v3255_v37, 0.0  ;;  %v3165_v5 = vadd.f32 %v4641_v56, %v6588_v14  ;;  %v3440_v26 = vmax.f32 %v3170_v36, 0.0  ;;  %v6937_v36 = vld [vmem:[#allocation11_spill] sm:$0xff] }
 0x652   : > { %v3442_v49 = vmax.f32 %v3180_v62, 0.0  ;;  %v3458_v48 = vmax.f32 %v3260_v52, 0.0  ;;  %4454 = vmatprep.subr.mxu0 %v3459_v16  ;;  %v3240_v62 = vadd.f32 %v3239_v35, %v6590_v9  ;;  %v3160_v16 = vadd.f32 %v3159_v39, %v6592_v61 }
 0x653   : > { %v6679_v46 = vpop.f32.mrf.mxu1  ;;  %4455 = vmatpush3.msra.mxu0 %v3443_v57  ;;  %v3235_v37 = vadd.f32 %v4662_v10, %v6594_v60  ;;  %v3455_v21 = vmax.f32 %v3245_v34, 0.0  ;;  %v3155_v14 = vadd.f32 %v4638_v8, %v6596_v50  ;;  %v3439_v6 = vmax.f32 %v3165_v5, 0.0  ;;  %v6703_v60 = vpop.permute.xlu0 %2758  ;;  %v6938_v34 = vld [vmem:[#allocation10_spill] sm:$0xff] }
 0x654   : > { %6935 = vst [vmem:[#allocation7_spill] sm:$0xff] %v6679_v46  ;;  %4456 = vmatprep.subr.mxu0 %v3458_v48  ;;  %v3230_v9 = vadd.f32 %v3229_v18, %v6598_v31  ;;  %v3454_v35 = vmax.f32 %v3240_v62, 0.0  ;;  %v6698_v57 = vpop.permute.xlu1 %2838  ;;  %v3150_v61 = vadd.f32 %v3149_v3, %v6600_v28  ;;  %v3438_v39 = vmax.f32 %v3160_v16, 0.0 }
 0x655   : > { %v6685_v17 = vpop.f32.mrf.mxu1  ;;  %4457 = vmatpush3.msra.mxu0 %v3442_v49  ;;  %v3225_v50 = vadd.f32 %v6650_v12, %v6602_v44  ;;  %v3453_v8 = vmax.f32 %v3235_v37, 0.0  ;;  %v3145_v31 = vadd.f32 %v6648_v20, %v6604_v22  ;;  %v3437_v10 = vmax.f32 %v3155_v14, 0.0  ;;  %v6944_v14 = vld [vmem:[#allocation16_spill] sm:$0xff] }
 0x656   : > { %4458 = vmatprep.subr.mxu0 %v3457_v59  ;;  %v3220_v28 = vadd.f32 %v6656_v1, %v6606_v29  ;;  %v3452_v3 = vmax.f32 %v3230_v9, 0.0  ;;  %v3436_v52 = vmax.f32 %v3150_v61, 0.0  ;;  %v3215_v44 = vadd.f32 %v6640_v53, %v6610_v24  ;;  %v6946_v61 = vld [vmem:[#allocation9_spill] sm:$0xff] }
 0x657   : > { %v6691_v30 = vpop.f32.mrf.mxu1  ;;  %4459 = vmatpush3.msra.mxu0 %v3441_v13  ;;  %v3451_v22 = vmax.f32 %v3225_v50, 0.0  ;;  %v3135_v12 = vadd.f32 %v6638_v25, %v6612_v42  ;;  %v3435_v29 = vmax.f32 %v3145_v31, 0.0  ;;  %v6725_v40 = vpop.permute.xlu0 %2753  ;;  %v3130_v24 = vadd.f32 %v6642_v58, %v6620_v11 }
 0x658   : > { %4460 = vmatprep.subr.mxu0 %v3456_v45  ;;  %v6719_v20 = vpop.permute.xlu1 %2833  ;;  %v3450_v55 = vmax.f32 %v3220_v28, 0.0  ;;  %v3434_v53 = vmax.f32 %v3140_v54, 0.0  ;;  %v3205_v42 = vadd.f32 %v6628_v23, %v6630_v7  ;;  %v3449_v25 = vmax.f32 %v3215_v44, 0.0  ;;  %v6941_v45 = vld [vmem:[#allocation12_spill] sm:$0xff] }
 0x659   : > { %v6695_v56 = vpop.f32.mrf.mxu1  ;;  %4461 = vmatpush3.msra.mxu0 %v3440_v26  ;;  %v3433_v49 = vmax.f32 %v3135_v12, 0.0  ;;  %v3448_v11 = vmax.f32 %v3210_v2, 0.0  ;;  %v3120_v59 = vadd.f32 %v6938_v34, %v6937_v36  ;;  %v3432_v23 = vmax.f32 %v3130_v24, 0.0  ;;  %v4104_v12 = vld [vmem:[%s6872_s8 + $0x20] sm:$0xff] }
 0x65a   : > { %4462 = vmatprep.subr.mxu0 %v3455_v21  ;;  %v3195_v13 = vadd.f32 %v6940_v4, %v6939_v15  ;;  %v3447_v62 = vmax.f32 %v3205_v42, 0.0  ;;  %v3115_v16 = vadd.f32 %v6942_v63, %v6941_v45  ;;  %v3431_v26 = vmax.f32 %v3125_v41, 0.0  ;;  %v6943_v21 = vld [vmem:[#allocation14_spill] sm:$0xff] }
 0x65b   : > { %v6701_v27 = vpop.f32.mrf.mxu1  ;;  %4463 = vmatpush3.msra.mxu0 %v3439_v6  ;;  %v6747_v5 = vpop.permute.xlu0 %2748  ;;  %v3190_v6 = vadd.f32 %v6944_v14, %v6943_v21  ;;  %v3446_v9 = vmax.f32 %v3200_v38, 0.0  ;;  %v3430_v50 = vmax.f32 %v3120_v59, 0.0 }
 0x65c   : > { %4464 = vmatprep.subr.mxu0 %v3454_v35  ;;  %v6741_v58 = vpop.permute.xlu1 %2828  ;;  %v6945_v35 = vld [vmem:[#allocation18_spill] sm:$0xff]  ;;  %v3445_v31 = vmax.f32 %v3195_v13, 0.0  ;;  %v3429_v28 = vmax.f32 %v3115_v16, 0.0 }
 0x65d   : > { %v6709_v18 = vpop.f32.mrf.mxu1  ;;  %4465 = vmatpush3.msra.mxu0 %v3438_v39  ;;  %v3110_v39 = vadd.f32 %v6946_v61, %v6945_v35 }
 0x65e   : > { %4466 = vmatprep.subr.mxu0 %v3453_v8 }
 0x65f   : > { %v6715_v33 = vpop.f32.mrf.mxu1  ;;  %4467 = vmatpush3.msra.mxu0 %v3437_v10  ;;  %v6759_v54 = vpop.permute.xlu0 %2743  ;;  %v3428_v44 = vmax.f32 %v3110_v39, 0.0 }
 0x660   : > { %4468 = vmatprep.subr.mxu0 %v3452_v3  ;;  %v6757_v10 = vpop.permute.xlu1 %2823 }
 0x661   : > { %v6723_v1 = vpop.f32.mrf.mxu1  ;;  %4469 = vmatpush3.msra.mxu0 %v3436_v52  ;;  %v3444_v52 = vmax.f32 %v3190_v6, 0.0 }
 0x662   : > { %4470 = vmatprep.subr.mxu0 %v3451_v22 }
 0x663   : > { %v6731_v32 = vpop.f32.mrf.mxu1  ;;  %4471 = vmatpush3.msra.mxu0 %v3435_v29  ;;  %v4107_v29 = vld [vmem:[%s6872_s8 + $0x38] sm:$0xff] }
 0x664   : > { %4472 = vmatprep.subr.mxu0 %v3450_v55  ;;  %v2819_v55 = vpop.permute.xlu1 %2818 }
 0x665   : > { %v6737_v48 = vpop.f32.mrf.mxu1  ;;  %4473 = vmatpush3.msra.mxu0 %v3434_v53  ;;  %v2739_v53 = vpop.permute.xlu0 %2738 }
 0x666   : > { %4474 = vmatprep.subr.mxu0 %v3449_v25 }
 0x667   : > { %v6745_v7 = vpop.f32.mrf.mxu1  ;;  %4475 = vmatpush3.msra.mxu0 %v3433_v49 }
 0x668   : > { %4476 = vmatprep.subr.mxu0 %v3448_v11  ;;  %v2814_v41 = vpop.permute.xlu1 %2813 }
 0x669   : > { %v4692_v37 = vpop.f32.mrf.mxu1  ;;  %4477 = vmatpush3.msra.mxu0 %v3432_v23  ;;  %v2734_v19 = vpop.permute.xlu0 %2733 }
 0x66a   : > { %4478 = vmatprep.subr.mxu0 %v3447_v62 }
 0x66b   : > { %v3329_v8 = vpop.f32.mrf.mxu1  ;;  %4479 = vmatpush3.msra.mxu0 %v3431_v26 }
 0x66c   : > { %4480 = vmatprep.subr.mxu0 %v3446_v9  ;;  %v2809_v36 = vpop.permute.xlu1 %2808  ;;  %v6948_v9 = vld [vmem:[#allocation19_spill] sm:$0xff] }
 0x66d   : > { %v4695_v3 = vpop.f32.mrf.mxu1  ;;  %4481 = vmatpush3.msra.mxu0 %v3430_v50  ;;  %v2729_v59 = vpop.permute.xlu0 %2728 }
 0x66e   : > { %4482 = vmatprep.subr.mxu0 %v3445_v31  ;;  %v3345_v14 = vadd.f32 %v4695_v3, %v6670_v0  ;;  %v3330_v0 = vadd.f32 %v3329_v8, %v6725_v40 }
 0x66f   : > { %v3339_v22 = vpop.f32.mrf.mxu1  ;;  %4483 = vmatpush3.msra.mxu0 %v3429_v28 }
 0x670   : > { %4484 = vmatprep.subr.mxu0 %v3444_v52  ;;  %v2804_v4 = vpop.permute.xlu1 %2803  ;;  %v3340_v61 = vadd.f32 %v3339_v22, %v6687_v47  ;;  %v3472_v40 = vmax.f32 %v3330_v0, 0.0 }
 0x671   : > { %v6767_v2 = vpop.f32.mrf.mxu1  ;;  %4485 = vmatpush3.msra.mxu0 %v3428_v44  ;;  %v2724_v62 = vpop.permute.xlu0 %2723  ;;  %v3335_v44 = vadd.f32 %v4692_v37, %v6703_v60 }
 0x672   : > { %3569 = vmatmul.mubr.f32.vlgmr.msra.gmra.mxu0 %v4104_v12  ;;  %v3475_v12 = vmax.f32 %v3345_v14, 0.0  ;;  %v3474_v3 = vmax.f32 %v3340_v61, 0.0 }
 0x673   : > { %v6769_v24 = vpop.f32.mrf.mxu1  ;;  %3638 = vmatprep.mubr.f32.mxu0 %v4107_v29 }
 0x674   : > { %6947 = vst [vmem:[#allocation13_spill] sm:$0xff] %v6769_v24  ;;  %v2799_v16 = vpop.permute.xlu1 %2798 }
 0x675   : > { %v6771_v42 = vpop.f32.mrf.mxu1  ;;  %v2719_v21 = vpop.permute.xlu0 %2718 }
 0x677   : > { %v6773_v25 = vpop.f32.mrf.mxu1 }
 0x678   : > { %v2794_v52 = vpop.permute.xlu1 %2793 }
 0x679   : > { %v6775_v49 = vpop.f32.mrf.mxu1  ;;  %v2714_v29 = vpop.permute.xlu0 %2713 }
 0x67b   : > { %v6777_v38 = vpop.f32.mrf.mxu1 }
 0x67d   : > { %v4707_v11 = vpop.f32.mrf.mxu1  ;;  %v2709_v8 = vpop.permute.xlu0 %2708 }
 0x67f   : > { %v6779_v34 = vpop.f32.mrf.mxu1 }
 0x681   : > { %v4710_v23 = vpop.f32.mrf.mxu1 }
 0x683   : > { %v3389_v15 = vpop.f32.mrf.mxu1 }
 0x685   : > { %v4713_v13 = vpop.f32.mrf.mxu1 }
 0x686   : > { %v3405_v47 = vadd.f32 %v4713_v13, %v6741_v58 }
 0x687   : > { %v3399_v45 = vpop.f32.mrf.mxu1 }
 0x688   : > { %v3400_v60 = vadd.f32 %v3399_v45, %v6757_v10  ;;  %v3487_v58 = vmax.f32 %v3405_v47, 0.0  ;;  %v3385_v45 = vadd.f32 %v4707_v11, %v2809_v36  ;;  %v3295_v11 = vadd.f32 %v6695_v56, %v2719_v21 }
 0x689   : > { %v4716_v63 = vpop.f32.mrf.mxu1 }
 0x68a   : > { %v3415_v50 = vadd.f32 %v4716_v63, %v6698_v57  ;;  %v3473_v57 = vmax.f32 %v3335_v44, 0.0  ;;  %v3320_v63 = vadd.f32 %v6745_v7, %v6759_v54  ;;  %v3305_v54 = vadd.f32 %v6709_v18, %v2729_v59 }
 0x68b   : > { %v3409_v26 = vpop.f32.mrf.mxu1  ;;  %v3370_v18 = vadd.f32 %v6777_v38, %v2794_v52 }
 0x68c   : > { %v3410_v46 = vadd.f32 %v3409_v26, %v6719_v20  ;;  %v3489_v22 = vmax.f32 %v3415_v50, 0.0  ;;  %v2789_v20 = vpop.permute.xlu1 %2788  ;;  %v3395_v26 = vadd.f32 %v4710_v23, %v2819_v55  ;;  %v3470_v10 = vmax.f32 %v3320_v63, 0.0  ;;  %v2704_v23 = vpop.permute.xlu0 %2703 }
 0x68d   : > { %v4719_v6 = vpop.f32.mrf.mxu1  ;;  %v3467_v36 = vmax.f32 %v3305_v54, 0.0  ;;  %v3480_v21 = vmax.f32 %v3370_v18, 0.0  ;;  %v3280_v38 = vadd.f32 %v6691_v30, %v2704_v23 }
 0x68e   : > { %v3425_v35 = vadd.f32 %v4719_v6, %v6948_v9  ;;  %v3488_v37 = vmax.f32 %v3410_v46, 0.0  ;;  %v3310_v46 = vadd.f32 %v6731_v32, %v2734_v19  ;;  %v3485_v14 = vmax.f32 %v3395_v26, 0.0 }
 0x68f   : > { %v3419_v39 = vpop.f32.mrf.mxu1  ;;  %v3375_v32 = vadd.f32 %v6775_v49, %v2799_v16  ;;  %v3483_v19 = vmax.f32 %v3385_v45, 0.0  ;;  %v3285_v49 = vadd.f32 %v6685_v17, %v2709_v8  ;;  %v3465_v16 = vmax.f32 %v3295_v11, 0.0 }
 0x690   : > { %v3491_v31 = vmax.f32 %v3425_v35, 0.0  ;;  %v3420_v28 = vadd.f32 %v3419_v39, %v6682_v43  ;;  %v3325_v43 = vadd.f32 %v6737_v48, %v6747_v5  ;;  %v3390_v48 = vadd.f32 %v3389_v15, %v2814_v41  ;;  %v2784_v7 = vpop.permute.xlu1 %2783 }
 0x691   : > { %v3486_v5 = vmax.f32 %v3400_v60, 0.0  ;;  %v3300_v41 = vadd.f32 %v6715_v33, %v2724_v62  ;;  %v3468_v15 = vmax.f32 %v3310_v46, 0.0  ;;  %v2699_v33 = vpop.permute.xlu0 %2698  ;;  %v3365_v62 = vadd.f32 %v6771_v42, %v2789_v20 }
 0x692   : > { %v3490_v24 = vmax.f32 %v3420_v28, 0.0  ;;  %4489 = vmatprep.subr.mxu0 %v3491_v31  ;;  %v3471_v13 = vmax.f32 %v3325_v43, 0.0  ;;  %v3481_v9 = vmax.f32 %v3375_v32, 0.0  ;;  %v3360_v56 = vadd.f32 %v6773_v25, %v2784_v7  ;;  %v6949_v31 = vld [vmem:[#allocation13_spill] sm:$0xff]  ;;  %v6950_v25 = vld [vmem:[#allocation7_spill] sm:$0xff] }
 0x693   : > { %4490 = vmatpush3.msra.mxu0 %v3475_v12  ;;  %v3479_v61 = vmax.f32 %v3365_v62, 0.0  ;;  %v3275_v42 = vadd.f32 %v6675_v51, %v2699_v33  ;;  %v3463_v50 = vmax.f32 %v3285_v49, 0.0  ;;  %v3462_v12 = vmax.f32 %v3280_v38, 0.0  ;;  %v4106_v51 = vld [vmem:[%s6872_s8 + $0x30] sm:$0xff] }
 0x694   : > { %4491 = vmatprep.subr.mxu0 %v3490_v24  ;;  %v3315_v24 = vadd.f32 %v6723_v1, %v2739_v53  ;;  %v3380_v1 = vadd.f32 %v6779_v34, %v2804_v4  ;;  %v3484_v53 = vmax.f32 %v3390_v48, 0.0  ;;  %v2779_v6 = vpop.permute.xlu1 %2778  ;;  %v3290_v34 = vadd.f32 %v6701_v27, %v2714_v29 }
 0x695   : > { %4492 = vmatpush3.msra.mxu0 %v3474_v3  ;;  %v3466_v4 = vmax.f32 %v3300_v41, 0.0  ;;  %v3355_v27 = vadd.f32 %v6767_v2, %v2779_v6  ;;  %v2694_v17 = vpop.permute.xlu0 %2693  ;;  %v3478_v52 = vmax.f32 %v3360_v56, 0.0  ;;  %v3461_v29 = vmax.f32 %v3275_v42, 0.0 }
 0x696   : > { %4493 = vmatprep.subr.mxu0 %v3489_v22  ;;  %v3469_v55 = vmax.f32 %v3315_v24, 0.0  ;;  %v3482_v59 = vmax.f32 %v3380_v1, 0.0  ;;  %v3464_v35 = vmax.f32 %v3290_v34, 0.0  ;;  %v3270_v44 = vadd.f32 %v6950_v25, %v2694_v17 }
 0x697   : > { %4494 = vmatpush3.msra.mxu0 %v3473_v57  ;;  %v3477_v30 = vmax.f32 %v3355_v27, 0.0 }
 0x698   : > { %4495 = vmatprep.subr.mxu0 %v3488_v37  ;;  %v2774_v39 = vpop.permute.xlu1 %2773  ;;  %v3460_v0 = vmax.f32 %v3270_v44, 0.0 }
 0x699   : > { %4496 = vmatpush3.msra.mxu0 %v3472_v40  ;;  %v3350_v28 = vadd.f32 %v6949_v31, %v2774_v39  ;;  %v3645_v40 = vld [vmem:[%s371_s20] sm:$0xff] }
 0x69a   : > { %4497 = vmatprep.subr.mxu0 %v3487_v58  ;;  %v6951_v58 = vlaneseq }
 0x69b   : > { %4498 = vmatpush3.msra.mxu0 %v3471_v13  ;;  %v3476_v2 = vmax.f32 %v3350_v28, 0.0 }
 0x69c   : > { %4499 = vmatprep.subr.mxu0 %v3486_v5  ;;  %v3502_v57 = vpop.permute.xlu1 %3501  ;;  %v3652_v24 = vand.u32 127, %v6951_v58 }
 0x69d   : > { %4500 = vmatpush3.msra.mxu0 %v3470_v10 }
 0x69e   : > { %4501 = vmatprep.subr.mxu0 %v3485_v14  ;;  %v3655_v46 = vsub.s32 15, %v3652_v24 }
 0x69f   : > { %4502 = vmatpush3.msra.mxu0 %v3469_v55 }
 0x6a0   : > { %4503 = vmatprep.subr.mxu0 %v3484_v53 }
 0x6a1   : > { %4504 = vmatpush3.msra.mxu0 %v3468_v15 }
 0x6a2   : > { %4505 = vmatprep.subr.mxu0 %v3483_v19 }
 0x6a3   : > { %4506 = vmatpush3.msra.mxu0 %v3467_v36  ;;  %v6952_v36 = vmov 0.0  }
 0x6a4   : > { %4507 = vmatprep.subr.mxu0 %v3482_v59 }
 0x6a5   : > { %4508 = vmatpush3.msra.mxu0 %v3466_v4 }
 0x6a6   : > { %4509 = vmatprep.subr.mxu0 %v3481_v9 }
 0x6a7   : > { %4510 = vmatpush3.msra.mxu0 %v3465_v16 }
 0x6a8   : > { %4511 = vmatprep.subr.mxu0 %v3480_v21 }
 0x6a9   : > { %4512 = vmatpush3.msra.mxu0 %v3464_v35 }
 0x6aa   : > { %4513 = vmatprep.subr.mxu0 %v3479_v61 }
 0x6ab   : > { %4514 = vmatpush3.msra.mxu0 %v3463_v50 }
 0x6ac   : > { %4515 = vmatprep.subr.mxu0 %v3478_v52 }
 0x6ad   : > { %4516 = vmatpush3.msra.mxu0 %v3462_v12 }
 0x6ae   : > { %4517 = vmatprep.subr.mxu0 %v3477_v30 }
 0x6af   : > { %4518 = vmatpush3.msra.mxu0 %v3461_v29 }
 0x6b0   : > { %4519 = vmatprep.subr.mxu0 %v3476_v2 }
 0x6b1   : > { %4520 = vmatpush3.msra.mxu0 %v3460_v0 }
 0x6b2   : > { %3639 = vmatmul.mubr.f32.vlgmr.msra.gmra.mxu0 %v4106_v51 }
 0x732   : > { %v4486_v3 = vpop.f32.mrf.mxu0 }
 0x734   : > { %v4487_v47 = vpop.f32.mrf.mxu0 }
 0x735   : > { %v4488_v22 = vadd.f32 %v4487_v47, %v4486_v3 }
 0x737   : > { %v3571_v37 = vadd.f32 %v4488_v22, %v3502_v57 }
 0x772   : > { %v4521_v43 = vpop.f32.mrf.mxu0 }
 0x774   : > { %v4522_v60 = vpop.f32.mrf.mxu0 }
 0x775   : > { %v4523_v20 = vadd.f32 %v4522_v60, %v4521_v43 }
 0x777   : > { %v3641_v63 = vadd.f32 %v4523_v20, %v3571_v37 }
 0x779   : > { %v3644_v8 = vmax.f32 %v3641_v63, 0.0 }
 0x77b   : > { %v3646_v26 = vadd.f32 %v3645_v40, %v3644_v8 }
 0x77d   : > { %vm3648_vm2 = vcmp.lt.s32.totalorder %v3646_v26, 0  ;;  %v3649_v13 = vsub.s32 2147483648, %v3646_v26 }
 0x77f   : > { %v3650_v48 = vsel %vm3648_vm2, %v3649_v13, %v3646_v26 }
 0x780   : > { %v3653_v5 = vshra.s32 %v3650_v48, 4 }
 0x782   : > { %v3654_v10 = vshll.u32 %v3653_v5, 4 }
 0x784   : > { %v3656_v45 = vor.u32 %v3655_v46, %v3654_v10 }
 0x786   : > { %v3657_v14 = vsel %vm403_vm0, %v3656_v45, 2147483648 }
 0x787   : > { %v3659_v7 = vshra.s32 %v3657_v14, 16  ;;  %v3658_v55 = vand.u32 65535, %v3657_v14 }
 0x789   : > { %v3661_v54 = vcvt.s32.f32 %v3659_v7  ;;  %v3660_v1 = vcvt.s32.f32 %v3658_v55 }
 0x78b   : > { %3662 = vmax.xlane.f32.xlu0 %v3661_v54 }
 0x814   : > { %v3663_v23 = vpop.xlane.xlu0 %3662 }
 0x815   : > { %vm3664_vm3 = vcmp.eq.f32.partialorder %v3661_v54, %v3663_v23  ;;  %v3669_v41 = vcvt.f32.s32 %v3663_v23 }
 0x816   : > { %v3665_v53 = vsel %vm3664_vm3, %v3660_v1, -inf }
 0x817   : > { %3666 = vmax.xlane.f32.xlu1 %v3665_v53  ;;  %v3670_v32 = vshll.u32 %v3669_v41, 16 }
 0x8a0   : > { %v3667_v15 = vpop.xlane.xlu1 %3666 }
 0x8a1   : > { %v3668_v19 = vcvt.f32.s32 %v3667_v15 }
 0x8a3   : > { %v3671_v11 = vadd.s32 %v3670_v32, %v3668_v19 }
 0x8a5   : > { %vm3672_vm4 = vcmp.eq.s32.totalorder %v3656_v45, %v3671_v11 }
 0x8a6   : > { %v4109_v18 = vsel %vm3672_vm4, 1.0, %v6952_v36 }
 0x8a7   : > { %3675 = vst.msk [vmem:[%s363_s26] sm:$0xff] %vm403_vm0, %v4109_v18 }
 0x8a8   : > { %4778 = shalt.err (!%p4775_p3)
}
 0x8a9   : > { %s4779_s20 = scalar_lea.hbm %s6827_s11, 128  ;;  %s4783_s25 = scalar_lea.hbm %s6874_s10, 256 }
 0x8aa   : > { %p4780_p4 = scmp.ne.s32.totalorder %s6827_s11, %s4779_s20  ;;  %p4784_p9 = scmp.lt.s32.totalorder %s6827_s11, %s6874_s10 }
 0x8ab   : > { %p4785_p10 = scmp.lt.s32.totalorder %s4783_s25, %s4779_s20 }
 0x8ac   : > { %p4781_p7 = pnand %p4780_p4, %p4923_p5 }
 0x8ad   : > { %p4786_p11 = por %p4785_p10, %p4784_p9 }
 0x8ae   : > { %p4782_p8 = pneg %p4781_p7 }
 0x8b0   : > { %p4787_p12 = pnand %p4786_p11, %p4782_p8 }
 0x8b2   : > { %4790 = shalt.err (!%p4787_p12)
}
 0x8b3   : > { %4722 = dma.vmem_to_hbm [thread:$0]  (%p4923_p5), %s3691_s28, 128, %s6827_s11, %s3677_s15  }
 0x8b4 PF: > { %p4728_p13 = scmp.ge.s32.totalorder %s4825_s16, 2  ;;  %s3702_s29 = sand.u32 1, %s4813_s13  }
 0x8b5   : > { %s3703_s22 = scalar_lea.sflag [#allocation3], %s3702_s29 }
 0x8b6   : > { %p4725_p0 = pnand %p4728_p13, %p4927_p6 }
 0x8b8   : > { %p4726_p1 = pneg %p4725_p0 }
 0x8ba   : > { %4808 = dma.done.wait (%p4726_p1), %s3703_s22, 128  }
 0x8bb   : > { %4810 = vsyncadd (%p4726_p1), %s3703_s22, 4294967168  ;;  %s6953_s17 = sld [smem:[#allocation5_spill]]  ;;  %p20_p2 = scmp.ge.s32.totalorder %s4910_s19, 4  }
 0x8bc   : > { %s6954_s15 = sld [smem:[#allocation6_spill]]  ;;  %s6955_s13 = smov %s4817_s14 }
 0x8bd   : > { %s6957_s16 = smov %s4910_s19  ;;  %22 = sbr.rel (!%p20_p2) target bundleno = 3 (0x3), region = 106 }
 0x8c1   : > { %s6956_s14 = smov %s6953_s17 }
 0x8c2   :  { %3708 = vsyncpa [#allocation3], 1 }
 0x8c3   :  { %3710 = vsyncpa [#allocation3 + $0x1], 1 }

</bundles_post_ra>
